<compile_context>
chip_gen: v5e
topology: v5e:2x2
jax: 0.10.0
libtpu: 0.0.40
codegen_flags: <defaults>
</compile_context>

<pallas_src>
import functools
import numpy as np
import jax
import jax.numpy as jnp
from jax.experimental import pallas as pl
from jax.experimental.pallas import tpu as pltpu

# ---- "globals" referenced by the PyTorch module's __init__ ----
SHAPES, LOCATIONS, COOLING_RATES = 3, 4, 3
SOAKING_TIMES, HEAT_TREATMENTS, FORGING_TEMPS, MAGNIFICATIONS = 3, 3, 3, 3
EMBEDDING_DIM = 16
GN_EPS = 1e-5
LABEL_ORDER = ("SHP", "Loc", "CR", "SK", "HT", "FT", "Mag")
LABEL_VOCABS = dict(SHP=SHAPES, Loc=LOCATIONS, CR=COOLING_RATES, SK=SOAKING_TIMES,
                    HT=HEAT_TREATMENTS, FT=FORGING_TEMPS, Mag=MAGNIFICATIONS)


# ----------------------------------------------------------------------------
# in-kernel math helpers
# ----------------------------------------------------------------------------
def _erf(x):
    # Abramowitz & Stegun 7.1.26 (|err| <= 1.5e-7): matches torch's exact
    # erf-based GELU to float32 precision and lowers cleanly in Mosaic.
    a1, a2, a3, a4, a5 = 0.254829592, -0.284496736, 1.421413741, -1.453152027, 1.061405429
    p = 0.3275911
    s = jnp.where(x >= 0, 1.0, -1.0)
    ax = jnp.abs(x)
    u = 1.0 / (1.0 + p * ax)
    poly = ((((a5 * u + a4) * u + a3) * u + a2) * u + a1) * u
    return s * (1.0 - poly * jnp.exp(-ax * ax))


def _gelu_exact(x):
    return 0.5 * x * (1.0 + _erf(x * 0.7071067811865476))


# ----------------------------------------------------------------------------
# fused Pallas kernel: one grid step == one sample of the whole Up.forward
# ----------------------------------------------------------------------------
def _up_fused_kernel(x_ref, skip_ref, t_ref, a_ref,           # per-sample inputs
                     up_ref, msk_ref,                          # per-call constants
                     w1_ref, g1_ref, b1_ref,
                     w2_ref, g2_ref, b2_ref,
                     w3_ref, g3_ref, b3_ref,
                     w4_ref, g4_ref, b4_ref,
                     wlab_ref, blab_ref, embw_ref, embb_ref,
                     o_ref, *, H, W, eps):
    HW = H * W
    f32 = jnp.float32
    masks = msk_ref[...]                                       # (9, HW) 0/1 f32
    mrows = [masks[j:j + 1, :] for j in range(9)]              # slice each row once

    def conv3x3(x, w_ref):
        # Conv2d(k=3, padding=1, bias=False) on a (Cin, HW) tile as ONE matmul:
        # stacked (9*Cin, HW) input = 9 rolled + boundary-masked views,
        # w_ref = (Cout, 9*Cin) with columns [j*Cin:(j+1)*Cin] = tap j = ky*3+kx.
        parts = []
        j = 0
        for dy in range(3):
            for dx in range(3):
                off = (dy - 1) * W + (dx - 1)
                if dy == 1 and dx == 1:                        # center tap, mask == 1
                    xs = x
                else:
                    # stacked[:, p] = x[:, (p + off) % HW]  ==  roll by -off
                    xs = pltpu.roll(x, shift=(-off) % HW, axis=1) * mrows[j]
                parts.append(xs)
                j += 1
        stacked = jnp.concatenate(parts, axis=0)               # (9*Cin, HW)
        return jnp.dot(w_ref[...], stacked, preferred_element_type=f32)   # (Cout, HW)

    def gn_affine(y, g_ref, b_ref):
        # GroupNorm(num_groups=1) over one sample, single-pass statistics
        # (biased variance, like PyTorch), then per-channel affine.
        n = y.shape[0] * y.shape[1]
        s = jnp.sum(y)
        s2 = jnp.sum(y * y)
        mean = s / n
        var = s2 / n - mean * mean
        return (y - mean) * jax.lax.rsqrt(var + eps) * g_ref[...] + b_ref[...]

    # --- bilinear 2x upsample (align_corners=True) == one matmul, then the
    #     torch.cat([skip_x, up(x)], dim=1) is a sublane concat ---------------
    up = jnp.dot(x_ref[0], up_ref[...], preferred_element_type=f32)       # (c2, HW)
    xin = jnp.concatenate([skip_ref[0], up], axis=0)                      # (cin, HW)

    # --- DoubleConv(in, in, residual=True): gelu(x + GN(conv(gelu(GN(conv(x)))))) ---
    h = _gelu_exact(gn_affine(conv3x3(xin, w1_ref), g1_ref, b1_ref))
    h = _gelu_exact(xin + gn_affine(conv3x3(h, w2_ref), g2_ref, b2_ref))
    # --- DoubleConv(in, out-7, mid=in//2): GN(conv(gelu(GN(conv(x))))) ------
    h = _gelu_exact(gn_affine(conv3x3(h, w3_ref), g3_ref, b3_ref))
    y = gn_affine(conv3x3(h, w4_ref), g4_ref, b4_ref)                     # (cconv, HW)
    cconv = y.shape[0]

    # --- 7 label heads: one block-diagonal (7, 7*ed) x (7*ed, HW) matmul ----
    lab = jnp.dot(a_ref[0], wlab_ref[...], preferred_element_type=f32) + blab_ref[...]  # (7, HW)

    # --- time embedding: SiLU -> Linear, done on VPU (broadcast mul + lane reduce) ---
    tv = t_ref[0]                                                         # (1, emb_dim)
    tv = tv * jax.nn.sigmoid(tv)
    temb = jnp.sum(embw_ref[...] * tv, axis=1, keepdims=True) + embb_ref[...]  # (cout, 1)

    # --- assemble the (cout, HW) output tile and store it once --------------
    top = y + temb[:cconv]                 # conv channels
    bot = lab + temb[cconv:]               # 7 label channels
    o_ref[0] = jnp.concatenate([top, bot], axis=0).astype(o_ref.dtype)


# ----------------------------------------------------------------------------
# host-side constant builders
# ----------------------------------------------------------------------------
def _interp_matrix(n_out, n_in):
    # nn.Upsample(scale_factor=2, mode='bilinear', align_corners=True) is a
    # separable linear map; this is the 1-D interpolation matrix.
    src = np.arange(n_out) * (n_in - 1) / (n_out - 1)
    i0 = np.clip(np.floor(src).astype(np.int64), 0, n_in - 2)
    w1 = (src - i0).astype(np.float32)
    m = np.zeros((n_out, n_in), np.float32)
    m[np.arange(n_out), i0] += 1.0 - w1
    m[np.arange(n_out), i0 + 1] += w1
    return m


def _upsample_matrix_T(h_out, w_out, h_in, w_in):
    mh = _interp_matrix(h_out, h_in)
    mw = _interp_matrix(w_out, w_in)
    return jnp.asarray(np.kron(mh, mw).T)          # (h_in*w_in, h_out*w_out)


def _shift_masks(H, W):
    # masks[j, p] = 1 iff tap j=(dy,dx) of output pixel p reads inside the image
    p = np.arange(H * W)
    py, px = p // W, p % W
    rows = []
    for dy in range(3):
        for dx in range(3):
            sy, sx = py + (dy - 1), px + (dx - 1)
            rows.append(((sy >= 0) & (sy < H) & (sx >= 0) & (sx < W)).astype(np.float32))
    return jnp.asarray(np.stack(rows))              # (9, H*W)


# ----------------------------------------------------------------------------
# parameters (torch-natural "raw" layout + one-time packed kernel layout)
# ----------------------------------------------------------------------------
def _pack_conv(w_oihw):
    # torch Conv2d weight (Cout, Cin, 3, 3) -> (Cout, 9*Cin); column block
    # [j*Cin:(j+1)*Cin] is tap j = ky*3 + kx (matches the in-kernel stacking).
    cout, cin = w_oihw.shape[0], w_oihw.shape[1]
    return jnp.transpose(w_oihw, (0, 2, 3, 1)).reshape(cout, 9 * cin)


def init_params(key, in_channels, out_channels, imsize, emb_dim):
    ks = iter(jax.random.split(key, 64))

    def nrm(shape, scale=0.1):
        return scale * jax.random.normal(next(ks), shape, jnp.float32)

    mid = in_channels // 2
    cconv = out_channels - 7
    hw = imsize * imsize

    raw = {}
    # DoubleConv(in, in, residual=True)
    raw["dc1_w1"] = nrm((in_channels, in_channels, 3, 3))
    raw["dc1_g1"] = 1.0 + nrm((in_channels,)); raw["dc1_b1"] = nrm((in_channels,))
    raw["dc1_w2"] = nrm((in_channels, in_channels, 3, 3))
    raw["dc1_g2"] = 1.0 + nrm((in_channels,)); raw["dc1_b2"] = nrm((in_channels,))
    # DoubleConv(in, out-7, mid=in//2)
    raw["dc2_w1"] = nrm((mid, in_channels, 3, 3))
    raw["dc2_g1"] = 1.0 + nrm((mid,)); raw["dc2_b1"] = nrm((mid,))
    raw["dc2_w2"] = nrm((cconv, mid, 3, 3))
    raw["dc2_g2"] = 1.0 + nrm((cconv,)); raw["dc2_b2"] = nrm((cconv,))
    # emb_layer: SiLU -> Linear(emb_dim, out_channels); torch weight layout (out, in)
    raw["emb_w"] = nrm((out_channels, emb_dim)); raw["emb_b"] = nrm((out_channels,))
    # 7 label heads: Embedding(vocab, EMBEDDING_DIM) -> Linear(EMBEDDING_DIM, imsize^2)
    for name in LABEL_ORDER:
        raw[f"{name}_tab"] = nrm((LABEL_VOCABS[name], EMBEDDING_DIM), 1.0)
        raw[f"{name}_w"] = nrm((hw, EMBEDDING_DIM))   # torch Linear weight (out, in)
        raw[f"{name}_b"] = nrm((hw,))

    # ---- one-time packing into the kernel layouts ----
    p = {"raw": raw}
    p["w1"], p["g1"], p["b1"] = _pack_conv(raw["dc1_w1"]), raw["dc1_g1"].reshape(-1, 1), raw["dc1_b1"].reshape(-1, 1)
    p["w2"], p["g2"], p["b2"] = _pack_conv(raw["dc1_w2"]), raw["dc1_g2"].reshape(-1, 1), raw["dc1_b2"].reshape(-1, 1)
    p["w3"], p["g3"], p["b3"] = _pack_conv(raw["dc2_w1"]), raw["dc2_g1"].reshape(-1, 1), raw["dc2_b1"].reshape(-1, 1)
    p["w4"], p["g4"], p["b4"] = _pack_conv(raw["dc2_w2"]), raw["dc2_g2"].reshape(-1, 1), raw["dc2_b2"].reshape(-1, 1)
    # label heads: stacked (7*ed, HW) weights and (7, HW) biases (no zero rows)
    p["wlab"] = jnp.concatenate([raw[f"{n}_w"].T for n in LABEL_ORDER], axis=0)
    p["blab"] = jnp.stack([raw[f"{n}_b"] for n in LABEL_ORDER], axis=0)
    p["embw"] = raw["emb_w"]
    p["embb"] = raw["emb_b"].reshape(-1, 1)
    for name in LABEL_ORDER:
        p[f"tab_{name}"] = raw[f"{name}_tab"]
    return p


# ----------------------------------------------------------------------------
# forward: tiny wrapper glue + ONE pallas_call
# ----------------------------------------------------------------------------
def _up_forward(p, x, skip_x, t, labels, *, imsize):
    B, c2, hs, ws = x.shape
    skip_c = skip_x.shape[1]
    assert skip_x.shape[2] == imsize and skip_x.shape[3] == imsize
    H = W = imsize
    HW = H * W
    s2 = hs * ws
    cin = skip_c + c2
    cout, emb_dim = p["embw"].shape
    cconv = cout - 7
    ed = EMBEDDING_DIM

    # ---- per-call glue (all O(KB)) ----
    x_small = x.reshape(B, c2, s2).astype(jnp.float32)
    skip_flat = skip_x.reshape(B, skip_c, HW).astype(jnp.float32)
    t_row = t.reshape(B, 1, emb_dim).astype(jnp.float32)
    # label embedding gather + block-diagonal placement (7 rows, no zero rows):
    #   a7[b, l, l*ed:(l+1)*ed] = Embedding_l(label_l[b]), elsewhere zero
    emb = jnp.stack([p[f"tab_{n}"][labels[n]] for n in LABEL_ORDER], axis=1)   # (B, 7, ed)
    eye7 = jnp.eye(7, dtype=jnp.float32)
    a7 = (eye7[None, :, :, None] * emb[:, None, :, :]).reshape(B, 7, 7 * ed)

    up_t = _upsample_matrix_T(H, W, hs, ws)     # (s2, HW) constant (64 KiB here)
    masks = _shift_masks(H, W)                  # (9, HW) constant

    kernel = functools.partial(_up_fused_kernel, H=H, W=W, eps=GN_EPS)
    batched = lambda b: (b, 0, 0)
    const2 = lambda b: (0, 0)

    in_specs = [
        pl.BlockSpec((1, c2, s2), batched),            # low-res image
        pl.BlockSpec((1, skip_c, HW), batched),        # skip image
        pl.BlockSpec((1, 1, emb_dim), batched),        # t as a row
        pl.BlockSpec((1, 7, 7 * ed), batched),         # label block-diagonal rows
        pl.BlockSpec((s2, HW), const2),                # upsample matrix^T
        pl.BlockSpec((9, HW), const2),                 # conv boundary masks
        pl.BlockSpec((cin, 9 * cin), const2), pl.BlockSpec((cin, 1), const2), pl.BlockSpec((cin, 1), const2),
        pl.BlockSpec((cin, 9 * cin), const2), pl.BlockSpec((cin, 1), const2), pl.BlockSpec((cin, 1), const2),
        pl.BlockSpec((cin // 2, 9 * cin), const2), pl.BlockSpec((cin // 2, 1), const2), pl.BlockSpec((cin // 2, 1), const2),
        pl.BlockSpec((cconv, 9 * (cin // 2)), const2), pl.BlockSpec((cconv, 1), const2), pl.BlockSpec((cconv, 1), const2),
        pl.BlockSpec((7 * ed, HW), const2),            # label head weights
        pl.BlockSpec((7, HW), const2),                 # label head biases
        pl.BlockSpec((cout, emb_dim), const2),         # time-emb Linear weight
        pl.BlockSpec((cout, 1), const2),               # time-emb Linear bias
    ]

    out = pl.pallas_call(
        kernel,
        out_shape=jax.ShapeDtypeStruct((B, cout, HW), jnp.float32),
        grid=(B,),
        in_specs=in_specs,
        out_specs=pl.BlockSpec((1, cout, HW), batched),
        compiler_params=pltpu.CompilerParams(
            dimension_semantics=("parallel",),
            vmem_limit_bytes=32 * 1024 * 1024),
    )(x_small, skip_flat, t_row, a7, up_t, masks,
      p["w1"], p["g1"], p["b1"], p["w2"], p["g2"], p["b2"],
      p["w3"], p["g3"], p["b3"], p["w4"], p["g4"], p["b4"],
      p["wlab"], p["blab"], p["embw"], p["embb"])
    return out.reshape(B, cout, H, W)           # (C, HW) -> NCHW for free


up_forward = jax.jit(_up_forward, static_argnames=("imsize",))


# ----------------------------------------------------------------------------
# pure-JAX reference (mirrors the PyTorch module) for a correctness check
# ----------------------------------------------------------------------------
def reference_forward(p, x, skip_x, t, labels, *, imsize):
    raw = p["raw"]
    H = W = imsize
    B = x.shape[0]

    def conv(z, w):
        return jax.lax.conv_general_dilated(z, w, window_strides=(1, 1),
                                            padding=((1, 1), (1, 1)),
                                            dimension_numbers=("NCHW", "OIHW", "NCHW"))

    def gn(z, g, b):
        mean = jnp.mean(z, axis=(1, 2, 3), keepdims=True)
        var = jnp.mean(jnp.square(z - mean), axis=(1, 2, 3), keepdims=True)
        zn = (z - mean) * jax.lax.rsqrt(var + GN_EPS)
        return zn * g[None, :, None, None] + b[None, :, None, None]

    gelu = functools.partial(jax.nn.gelu, approximate=False)

    mh = jnp.asarray(_interp_matrix(H, x.shape[2]))
    mw = jnp.asarray(_interp_matrix(W, x.shape[3]))
    x_up = jnp.einsum("oh,pw,bchw->bcop", mh, mw, x)
    xin = jnp.concatenate([skip_x, x_up], axis=1)

    h = gelu(gn(conv(xin, raw["dc1_w1"]), raw["dc1_g1"], raw["dc1_b1"]))
    h = gelu(xin + gn(conv(h, raw["dc1_w2"]), raw["dc1_g2"], raw["dc1_b2"]))
    h = gelu(gn(conv(h, raw["dc2_w1"]), raw["dc2_g1"], raw["dc2_b1"]))
    h = gn(conv(h, raw["dc2_w2"]), raw["dc2_g2"], raw["dc2_b2"])          # (B, out-7, H, W)

    lab_maps = []
    for n in LABEL_ORDER:
        e = raw[f"{n}_tab"][labels[n]]                                    # (B, ed)
        m = e @ raw[f"{n}_w"].T + raw[f"{n}_b"]                           # (B, HW)
        lab_maps.append(m.reshape(B, 1, H, W))
    h = jnp.concatenate([h] + lab_maps, axis=1)                           # (B, out, H, W)

    temb = jax.nn.silu(t) @ raw["emb_w"].T + raw["emb_b"]                 # (B, out)
    return h + temb[:, :, None, None]


# ----------------------------------------------------------------------------
if __name__ == "__main__":
    B = 2
    in_channels = 8       # cat([skip_x(4ch), upsampled x(4ch)], dim=1)
    out_channels = 16     # conv -> out_channels - 7 = 9 channels, + 7 label maps
    imsize = 16
    emb_dim = 32

    key = jax.random.PRNGKey(0)
    kp, kx, ks, kt, kl = jax.random.split(key, 5)
    params = init_params(kp, in_channels, out_channels, imsize, emb_dim)

    x = jax.random.normal(kx, (B, in_channels // 2, imsize // 2, imsize // 2), jnp.float32)
    skip_x = jax.random.normal(ks, (B, in_channels // 2, imsize, imsize), jnp.float32)
    t = jax.random.normal(kt, (B, emb_dim), jnp.float32)
    lkeys = jax.random.split(kl, len(LABEL_ORDER))
    labels = {n: jax.random.randint(k, (B,), 0, LABEL_VOCABS[n], jnp.int32)
              for n, k in zip(LABEL_ORDER, lkeys)}

    out = up_forward(params, x, skip_x, t, labels, imsize=imsize)
    out = jax.block_until_ready(out)
    assert out.shape == (B, out_channels, imsize, imsize), out.shape
    assert bool(jnp.all(jnp.isfinite(out)))

    ref = jax.block_until_ready(reference_forward(params, x, skip_x, t, labels, imsize=imsize))
    err = float(jnp.max(jnp.abs(out - ref)))
    assert np.isfinite(err) and err < 1e-3, f"max |pallas - reference| = {err}"
    print("KERNEL_OK")
</pallas_src>

<mosaic_0001>
module attributes {stable_mosaic.version = 11 : i64} {
  func.func @_up_fused_kernel(%arg0: i32, %arg1: memref<1x4x64xf32, #tpu.memory_space<vmem>>, %arg2: memref<1x4x256xf32, #tpu.memory_space<vmem>>, %arg3: memref<1x1x32xf32, #tpu.memory_space<vmem>>, %arg4: memref<1x7x112xf32, #tpu.memory_space<vmem>>, %arg5: memref<64x256xf32, #tpu.memory_space<vmem>>, %arg6: memref<9x256xf32, #tpu.memory_space<vmem>>, %arg7: memref<8x72xf32, #tpu.memory_space<vmem>>, %arg8: memref<8x1xf32, #tpu.memory_space<vmem>>, %arg9: memref<8x1xf32, #tpu.memory_space<vmem>>, %arg10: memref<8x72xf32, #tpu.memory_space<vmem>>, %arg11: memref<8x1xf32, #tpu.memory_space<vmem>>, %arg12: memref<8x1xf32, #tpu.memory_space<vmem>>, %arg13: memref<4x72xf32, #tpu.memory_space<vmem>>, %arg14: memref<4x1xf32, #tpu.memory_space<vmem>>, %arg15: memref<4x1xf32, #tpu.memory_space<vmem>>, %arg16: memref<9x36xf32, #tpu.memory_space<vmem>>, %arg17: memref<9x1xf32, #tpu.memory_space<vmem>>, %arg18: memref<9x1xf32, #tpu.memory_space<vmem>>, %arg19: memref<112x256xf32, #tpu.memory_space<vmem>>, %arg20: memref<7x256xf32, #tpu.memory_space<vmem>>, %arg21: memref<16x32xf32, #tpu.memory_space<vmem>>, %arg22: memref<16x1xf32, #tpu.memory_space<vmem>>, %arg23: memref<1x16x256xf32, #tpu.memory_space<vmem>>) attributes {dimension_semantics = [#tpu.dimension_semantics<parallel>], iteration_bounds = array<i64: 2>, scalar_prefetch = 0 : i64, scratch_operands = 0 : i64, tpu.core_type = #tpu.core_type<tc>, window_params = [{transform_indices = @transform_0, window_bounds = array<i64: 1, 4, 64>}, {transform_indices = @transform_1, window_bounds = array<i64: 1, 4, 256>}, {transform_indices = @transform_2, window_bounds = array<i64: 1, 1, 32>}, {transform_indices = @transform_3, window_bounds = array<i64: 1, 7, 112>}, {pipeline_mode = #tpu.pipeline_mode<synchronous>, transform_indices = @transform_4, window_bounds = array<i64: 64, 256>}, {pipeline_mode = #tpu.pipeline_mode<synchronous>, transform_indices = @transform_5, window_bounds = array<i64: 9, 256>}, {pipeline_mode = #tpu.pipeline_mode<synchronous>, transform_indices = @transform_6, window_bounds = array<i64: 8, 72>}, {pipeline_mode = #tpu.pipeline_mode<synchronous>, transform_indices = @transform_7, window_bounds = array<i64: 8, 1>}, {pipeline_mode = #tpu.pipeline_mode<synchronous>, transform_indices = @transform_8, window_bounds = array<i64: 8, 1>}, {pipeline_mode = #tpu.pipeline_mode<synchronous>, transform_indices = @transform_9, window_bounds = array<i64: 8, 72>}, {pipeline_mode = #tpu.pipeline_mode<synchronous>, transform_indices = @transform_10, window_bounds = array<i64: 8, 1>}, {pipeline_mode = #tpu.pipeline_mode<synchronous>, transform_indices = @transform_11, window_bounds = array<i64: 8, 1>}, {pipeline_mode = #tpu.pipeline_mode<synchronous>, transform_indices = @transform_12, window_bounds = array<i64: 4, 72>}, {pipeline_mode = #tpu.pipeline_mode<synchronous>, transform_indices = @transform_13, window_bounds = array<i64: 4, 1>}, {pipeline_mode = #tpu.pipeline_mode<synchronous>, transform_indices = @transform_14, window_bounds = array<i64: 4, 1>}, {pipeline_mode = #tpu.pipeline_mode<synchronous>, transform_indices = @transform_15, window_bounds = array<i64: 9, 36>}, {pipeline_mode = #tpu.pipeline_mode<synchronous>, transform_indices = @transform_16, window_bounds = array<i64: 9, 1>}, {pipeline_mode = #tpu.pipeline_mode<synchronous>, transform_indices = @transform_17, window_bounds = array<i64: 9, 1>}, {pipeline_mode = #tpu.pipeline_mode<synchronous>, transform_indices = @transform_18, window_bounds = array<i64: 112, 256>}, {pipeline_mode = #tpu.pipeline_mode<synchronous>, transform_indices = @transform_19, window_bounds = array<i64: 7, 256>}, {pipeline_mode = #tpu.pipeline_mode<synchronous>, transform_indices = @transform_20, window_bounds = array<i64: 16, 32>}, {pipeline_mode = #tpu.pipeline_mode<synchronous>, transform_indices = @transform_21, window_bounds = array<i64: 16, 1>}, {transform_indices = @transform_22, window_bounds = array<i64: 1, 16, 256>}]} {
    %c0 = arith.constant 0 : index
    %c0_0 = arith.constant 0 : index
    %0 = vector.load %arg6[%c0, %c0_0] : memref<9x256xf32, #tpu.memory_space<vmem>>, vector<9x256xf32>
    %1 = vector.extract_strided_slice %0 {offsets = [0, 0], sizes = [1, 256], strides = [1, 1]} : vector<9x256xf32> to vector<1x256xf32>
    %2 = vector.extract_strided_slice %0 {offsets = [1, 0], sizes = [1, 256], strides = [1, 1]} : vector<9x256xf32> to vector<1x256xf32>
    %3 = vector.extract_strided_slice %0 {offsets = [2, 0], sizes = [1, 256], strides = [1, 1]} : vector<9x256xf32> to vector<1x256xf32>
    %4 = vector.extract_strided_slice %0 {offsets = [3, 0], sizes = [1, 256], strides = [1, 1]} : vector<9x256xf32> to vector<1x256xf32>
    %5 = vector.extract_strided_slice %0 {offsets = [5, 0], sizes = [1, 256], strides = [1, 1]} : vector<9x256xf32> to vector<1x256xf32>
    %6 = vector.extract_strided_slice %0 {offsets = [6, 0], sizes = [1, 256], strides = [1, 1]} : vector<9x256xf32> to vector<1x256xf32>
    %7 = vector.extract_strided_slice %0 {offsets = [7, 0], sizes = [1, 256], strides = [1, 1]} : vector<9x256xf32> to vector<1x256xf32>
    %8 = vector.extract_strided_slice %0 {offsets = [8, 0], sizes = [1, 256], strides = [1, 1]} : vector<9x256xf32> to vector<1x256xf32>
    %c0_1 = arith.constant 0 : index
    %c0_2 = arith.constant 0 : index
    %c0_3 = arith.constant 0 : index
    %9 = vector.load %arg1[%c0_1, %c0_2, %c0_3] : memref<1x4x64xf32, #tpu.memory_space<vmem>>, vector<1x4x64xf32>
    %10 = vector.shape_cast %9 : vector<1x4x64xf32> to vector<4x64xf32>
    %c0_4 = arith.constant 0 : index
    %c0_5 = arith.constant 0 : index
    %11 = vector.load %arg5[%c0_4, %c0_5] : memref<64x256xf32, #tpu.memory_space<vmem>>, vector<64x256xf32>
    %cst = arith.constant dense<0.000000e+00> : vector<4x256xf32>
    %12 = tpu.matmul %10, %11, %cst {dimension_numbers = #tpu.dot_dimension_numbers<[1], [0], [0], [1], [0, 0, 1, 1], [], []>} : vector<4x64xf32>, vector<64x256xf32>, vector<4x256xf32> -> vector<4x256xf32>
    %c0_6 = arith.constant 0 : index
    %c0_7 = arith.constant 0 : index
    %c0_8 = arith.constant 0 : index
    %13 = vector.load %arg2[%c0_6, %c0_7, %c0_8] : memref<1x4x256xf32, #tpu.memory_space<vmem>>, vector<1x4x256xf32>
    %14 = vector.shape_cast %13 : vector<1x4x256xf32> to vector<4x256xf32>
    %15 = tpu.concatenate %14, %12 in 0 : vector<4x256xf32>, vector<4x256xf32> -> vector<8x256xf32>
    %c17_i32 = arith.constant 17 : i32
    %16 = tpu.dynamic_rotate %15 by %c17_i32 dim 1 : vector<8x256xf32>, i32 -> vector<8x256xf32>
    %17 = vector.broadcast %1 : vector<1x256xf32> to vector<8x256xf32>
    %18 = arith.mulf %16, %17 : vector<8x256xf32>
    %c16_i32 = arith.constant 16 : i32
    %19 = tpu.dynamic_rotate %15 by %c16_i32 dim 1 : vector<8x256xf32>, i32 -> vector<8x256xf32>
    %20 = vector.broadcast %2 : vector<1x256xf32> to vector<8x256xf32>
    %21 = arith.mulf %19, %20 : vector<8x256xf32>
    %c15_i32 = arith.constant 15 : i32
    %22 = tpu.dynamic_rotate %15 by %c15_i32 dim 1 : vector<8x256xf32>, i32 -> vector<8x256xf32>
    %23 = vector.broadcast %3 : vector<1x256xf32> to vector<8x256xf32>
    %24 = arith.mulf %22, %23 : vector<8x256xf32>
    %c1_i32 = arith.constant 1 : i32
    %25 = tpu.dynamic_rotate %15 by %c1_i32 dim 1 : vector<8x256xf32>, i32 -> vector<8x256xf32>
    %26 = vector.broadcast %4 : vector<1x256xf32> to vector<8x256xf32>
    %27 = arith.mulf %25, %26 : vector<8x256xf32>
    %c255_i32 = arith.constant 255 : i32
    %28 = tpu.dynamic_rotate %15 by %c255_i32 dim 1 : vector<8x256xf32>, i32 -> vector<8x256xf32>
    %29 = vector.broadcast %5 : vector<1x256xf32> to vector<8x256xf32>
    %30 = arith.mulf %28, %29 : vector<8x256xf32>
    %c241_i32 = arith.constant 241 : i32
    %31 = tpu.dynamic_rotate %15 by %c241_i32 dim 1 : vector<8x256xf32>, i32 -> vector<8x256xf32>
    %32 = vector.broadcast %6 : vector<1x256xf32> to vector<8x256xf32>
    %33 = arith.mulf %31, %32 : vector<8x256xf32>
    %c240_i32 = arith.constant 240 : i32
    %34 = tpu.dynamic_rotate %15 by %c240_i32 dim 1 : vector<8x256xf32>, i32 -> vector<8x256xf32>
    %35 = vector.broadcast %7 : vector<1x256xf32> to vector<8x256xf32>
    %36 = arith.mulf %34, %35 : vector<8x256xf32>
    %c239_i32 = arith.constant 239 : i32
    %37 = tpu.dynamic_rotate %15 by %c239_i32 dim 1 : vector<8x256xf32>, i32 -> vector<8x256xf32>
    %38 = vector.broadcast %8 : vector<1x256xf32> to vector<8x256xf32>
    %39 = arith.mulf %37, %38 : vector<8x256xf32>
    %40 = tpu.concatenate %18, %21, %24, %27, %15, %30, %33, %36, %39 in 0 : vector<8x256xf32>, vector<8x256xf32>, vector<8x256xf32>, vector<8x256xf32>, vector<8x256xf32>, vector<8x256xf32>, vector<8x256xf32>, vector<8x256xf32>, vector<8x256xf32> -> vector<72x256xf32>
    %c0_9 = arith.constant 0 : index
    %c0_10 = arith.constant 0 : index
    %41 = vector.load %arg7[%c0_9, %c0_10] : memref<8x72xf32, #tpu.memory_space<vmem>>, vector<8x72xf32>
    %cst_11 = arith.constant dense<0.000000e+00> : vector<8x256xf32>
    %42 = tpu.matmul %41, %40, %cst_11 {dimension_numbers = #tpu.dot_dimension_numbers<[1], [0], [0], [1], [0, 0, 1, 1], [], []>} : vector<8x72xf32>, vector<72x256xf32>, vector<8x256xf32> -> vector<8x256xf32>
    %43 = vector.shape_cast %42 : vector<8x256xf32> to vector<1x8x256xf32>
    %cst_12 = arith.constant dense<0.000000e+00> : vector<1xf32>
    %44 = vector.multi_reduction <add>, %43, %cst_12 [1, 2] : vector<1x8x256xf32> to vector<1xf32>
    %45 = vector.shape_cast %44 : vector<1xf32> to vector<1x1x1xf32>
    %46 = vector.extract %45[0, 0, 0] : f32 from vector<1x1x1xf32>
    %47 = arith.mulf %42, %42 : vector<8x256xf32>
    %48 = vector.shape_cast %47 : vector<8x256xf32> to vector<1x8x256xf32>
    %cst_13 = arith.constant dense<0.000000e+00> : vector<1xf32>
    %49 = vector.multi_reduction <add>, %48, %cst_13 [1, 2] : vector<1x8x256xf32> to vector<1xf32>
    %50 = vector.shape_cast %49 : vector<1xf32> to vector<1x1x1xf32>
    %51 = vector.extract %50[0, 0, 0] : f32 from vector<1x1x1xf32>
    %cst_14 = arith.constant 2.048000e+03 : f32
    %52 = arith.divf %46, %cst_14 : f32
    %cst_15 = arith.constant 2.048000e+03 : f32
    %53 = arith.divf %51, %cst_15 : f32
    %54 = arith.mulf %52, %52 : f32
    %55 = arith.subf %53, %54 : f32
    %56 = vector.broadcast %52 : f32 to vector<8x256xf32>
    %57 = arith.subf %42, %56 : vector<8x256xf32>
    %cst_16 = arith.constant 9.99999974E-6 : f32
    %58 = arith.addf %55, %cst_16 : f32
    %59 = math.rsqrt %58 : f32
    %60 = vector.broadcast %59 : f32 to vector<8x256xf32>
    %61 = arith.mulf %57, %60 : vector<8x256xf32>
    %c0_17 = arith.constant 0 : index
    %c0_18 = arith.constant 0 : index
    %62 = vector.load %arg8[%c0_17, %c0_18] : memref<8x1xf32, #tpu.memory_space<vmem>>, vector<8x1xf32>
    %63 = vector.broadcast %62 : vector<8x1xf32> to vector<8x256xf32>
    %64 = arith.mulf %61, %63 : vector<8x256xf32>
    %c0_19 = arith.constant 0 : index
    %c0_20 = arith.constant 0 : index
    %65 = vector.load %arg9[%c0_19, %c0_20] : memref<8x1xf32, #tpu.memory_space<vmem>>, vector<8x1xf32>
    %66 = vector.broadcast %65 : vector<8x1xf32> to vector<8x256xf32>
    %67 = arith.addf %64, %66 : vector<8x256xf32>
    %cst_21 = arith.constant 5.000000e-01 : f32
    %68 = vector.broadcast %cst_21 : f32 to vector<8x256xf32>
    %69 = arith.mulf %68, %67 : vector<8x256xf32>
    %cst_22 = arith.constant 0.707106769 : f32
    %70 = vector.broadcast %cst_22 : f32 to vector<8x256xf32>
    %71 = arith.mulf %67, %70 : vector<8x256xf32>
    %cst_23 = arith.constant 0.000000e+00 : f32
    %72 = vector.broadcast %cst_23 : f32 to vector<8x256xf32>
    %73 = arith.cmpf oge, %71, %72 : vector<8x256xf32>
    %cst_24 = arith.constant 1.000000e+00 : f32
    %cst_25 = arith.constant -1.000000e+00 : f32
    %74 = vector.broadcast %cst_24 : f32 to vector<8x256xf32>
    %75 = vector.broadcast %cst_25 : f32 to vector<8x256xf32>
    %76 = arith.select %73, %74, %75 : vector<8x256xi1>, vector<8x256xf32>
    %77 = math.absf %71 : vector<8x256xf32>
    %cst_26 = arith.constant 0.327591091 : f32
    %78 = vector.broadcast %cst_26 : f32 to vector<8x256xf32>
    %79 = arith.mulf %78, %77 : vector<8x256xf32>
    %cst_27 = arith.constant 1.000000e+00 : f32
    %80 = vector.broadcast %cst_27 : f32 to vector<8x256xf32>
    %81 = arith.addf %80, %79 : vector<8x256xf32>
    %cst_28 = arith.constant 1.000000e+00 : f32
    %82 = vector.broadcast %cst_28 : f32 to vector<8x256xf32>
    %83 = arith.divf %82, %81 : vector<8x256xf32>
    %cst_29 = arith.constant 1.06140542 : f32
    %84 = vector.broadcast %cst_29 : f32 to vector<8x256xf32>
    %85 = arith.mulf %84, %83 : vector<8x256xf32>
    %cst_30 = arith.constant -1.45315206 : f32
    %86 = vector.broadcast %cst_30 : f32 to vector<8x256xf32>
    %87 = arith.addf %85, %86 : vector<8x256xf32>
    %88 = arith.mulf %87, %83 : vector<8x256xf32>
    %cst_31 = arith.constant 1.42141378 : f32
    %89 = vector.broadcast %cst_31 : f32 to vector<8x256xf32>
    %90 = arith.addf %88, %89 : vector<8x256xf32>
    %91 = arith.mulf %90, %83 : vector<8x256xf32>
    %cst_32 = arith.constant -0.284496725 : f32
    %92 = vector.broadcast %cst_32 : f32 to vector<8x256xf32>
    %93 = arith.addf %91, %92 : vector<8x256xf32>
    %94 = arith.mulf %93, %83 : vector<8x256xf32>
    %cst_33 = arith.constant 0.254829586 : f32
    %95 = vector.broadcast %cst_33 : f32 to vector<8x256xf32>
    %96 = arith.addf %94, %95 : vector<8x256xf32>
    %97 = arith.mulf %96, %83 : vector<8x256xf32>
    %cst_34 = arith.constant 0.000000e+00 : f32
    %98 = vector.broadcast %cst_34 : f32 to vector<8x256xf32>
    %99 = arith.subf %98, %77 : vector<8x256xf32>
    %100 = arith.mulf %99, %77 : vector<8x256xf32>
    %101 = math.exp %100 : vector<8x256xf32>
    %102 = arith.mulf %97, %101 : vector<8x256xf32>
    %cst_35 = arith.constant 1.000000e+00 : f32
    %103 = vector.broadcast %cst_35 : f32 to vector<8x256xf32>
    %104 = arith.subf %103, %102 : vector<8x256xf32>
    %105 = arith.mulf %76, %104 : vector<8x256xf32>
    %cst_36 = arith.constant 1.000000e+00 : f32
    %106 = vector.broadcast %cst_36 : f32 to vector<8x256xf32>
    %107 = arith.addf %106, %105 : vector<8x256xf32>
    %108 = arith.mulf %69, %107 : vector<8x256xf32>
    %c17_i32_37 = arith.constant 17 : i32
    %109 = tpu.dynamic_rotate %108 by %c17_i32_37 dim 1 : vector<8x256xf32>, i32 -> vector<8x256xf32>
    %110 = vector.broadcast %1 : vector<1x256xf32> to vector<8x256xf32>
    %111 = arith.mulf %109, %110 : vector<8x256xf32>
    %c16_i32_38 = arith.constant 16 : i32
    %112 = tpu.dynamic_rotate %108 by %c16_i32_38 dim 1 : vector<8x256xf32>, i32 -> vector<8x256xf32>
    %113 = vector.broadcast %2 : vector<1x256xf32> to vector<8x256xf32>
    %114 = arith.mulf %112, %113 : vector<8x256xf32>
    %c15_i32_39 = arith.constant 15 : i32
    %115 = tpu.dynamic_rotate %108 by %c15_i32_39 dim 1 : vector<8x256xf32>, i32 -> vector<8x256xf32>
    %116 = vector.broadcast %3 : vector<1x256xf32> to vector<8x256xf32>
    %117 = arith.mulf %115, %116 : vector<8x256xf32>
    %c1_i32_40 = arith.constant 1 : i32
    %118 = tpu.dynamic_rotate %108 by %c1_i32_40 dim 1 : vector<8x256xf32>, i32 -> vector<8x256xf32>
    %119 = vector.broadcast %4 : vector<1x256xf32> to vector<8x256xf32>
    %120 = arith.mulf %118, %119 : vector<8x256xf32>
    %c255_i32_41 = arith.constant 255 : i32
    %121 = tpu.dynamic_rotate %108 by %c255_i32_41 dim 1 : vector<8x256xf32>, i32 -> vector<8x256xf32>
    %122 = vector.broadcast %5 : vector<1x256xf32> to vector<8x256xf32>
    %123 = arith.mulf %121, %122 : vector<8x256xf32>
    %c241_i32_42 = arith.constant 241 : i32
    %124 = tpu.dynamic_rotate %108 by %c241_i32_42 dim 1 : vector<8x256xf32>, i32 -> vector<8x256xf32>
    %125 = vector.broadcast %6 : vector<1x256xf32> to vector<8x256xf32>
    %126 = arith.mulf %124, %125 : vector<8x256xf32>
    %c240_i32_43 = arith.constant 240 : i32
    %127 = tpu.dynamic_rotate %108 by %c240_i32_43 dim 1 : vector<8x256xf32>, i32 -> vector<8x256xf32>
    %128 = vector.broadcast %7 : vector<1x256xf32> to vector<8x256xf32>
    %129 = arith.mulf %127, %128 : vector<8x256xf32>
    %c239_i32_44 = arith.constant 239 : i32
    %130 = tpu.dynamic_rotate %108 by %c239_i32_44 dim 1 : vector<8x256xf32>, i32 -> vector<8x256xf32>
    %131 = vector.broadcast %8 : vector<1x256xf32> to vector<8x256xf32>
    %132 = arith.mulf %130, %131 : vector<8x256xf32>
    %133 = tpu.concatenate %111, %114, %117, %120, %108, %123, %126, %129, %132 in 0 : vector<8x256xf32>, vector<8x256xf32>, vector<8x256xf32>, vector<8x256xf32>, vector<8x256xf32>, vector<8x256xf32>, vector<8x256xf32>, vector<8x256xf32>, vector<8x256xf32> -> vector<72x256xf32>
    %c0_45 = arith.constant 0 : index
    %c0_46 = arith.constant 0 : index
    %134 = vector.load %arg10[%c0_45, %c0_46] : memref<8x72xf32, #tpu.memory_space<vmem>>, vector<8x72xf32>
    %cst_47 = arith.constant dense<0.000000e+00> : vector<8x256xf32>
    %135 = tpu.matmul %134, %133, %cst_47 {dimension_numbers = #tpu.dot_dimension_numbers<[1], [0], [0], [1], [0, 0, 1, 1], [], []>} : vector<8x72xf32>, vector<72x256xf32>, vector<8x256xf32> -> vector<8x256xf32>
    %136 = vector.shape_cast %135 : vector<8x256xf32> to vector<1x8x256xf32>
    %cst_48 = arith.constant dense<0.000000e+00> : vector<1xf32>
    %137 = vector.multi_reduction <add>, %136, %cst_48 [1, 2] : vector<1x8x256xf32> to vector<1xf32>
    %138 = vector.shape_cast %137 : vector<1xf32> to vector<1x1x1xf32>
    %139 = vector.extract %138[0, 0, 0] : f32 from vector<1x1x1xf32>
    %140 = arith.mulf %135, %135 : vector<8x256xf32>
    %141 = vector.shape_cast %140 : vector<8x256xf32> to vector<1x8x256xf32>
    %cst_49 = arith.constant dense<0.000000e+00> : vector<1xf32>
    %142 = vector.multi_reduction <add>, %141, %cst_49 [1, 2] : vector<1x8x256xf32> to vector<1xf32>
    %143 = vector.shape_cast %142 : vector<1xf32> to vector<1x1x1xf32>
    %144 = vector.extract %143[0, 0, 0] : f32 from vector<1x1x1xf32>
    %cst_50 = arith.constant 2.048000e+03 : f32
    %145 = arith.divf %139, %cst_50 : f32
    %cst_51 = arith.constant 2.048000e+03 : f32
    %146 = arith.divf %144, %cst_51 : f32
    %147 = arith.mulf %145, %145 : f32
    %148 = arith.subf %146, %147 : f32
    %149 = vector.broadcast %145 : f32 to vector<8x256xf32>
    %150 = arith.subf %135, %149 : vector<8x256xf32>
    %cst_52 = arith.constant 9.99999974E-6 : f32
    %151 = arith.addf %148, %cst_52 : f32
    %152 = math.rsqrt %151 : f32
    %153 = vector.broadcast %152 : f32 to vector<8x256xf32>
    %154 = arith.mulf %150, %153 : vector<8x256xf32>
    %c0_53 = arith.constant 0 : index
    %c0_54 = arith.constant 0 : index
    %155 = vector.load %arg11[%c0_53, %c0_54] : memref<8x1xf32, #tpu.memory_space<vmem>>, vector<8x1xf32>
    %156 = vector.broadcast %155 : vector<8x1xf32> to vector<8x256xf32>
    %157 = arith.mulf %154, %156 : vector<8x256xf32>
    %c0_55 = arith.constant 0 : index
    %c0_56 = arith.constant 0 : index
    %158 = vector.load %arg12[%c0_55, %c0_56] : memref<8x1xf32, #tpu.memory_space<vmem>>, vector<8x1xf32>
    %159 = vector.broadcast %158 : vector<8x1xf32> to vector<8x256xf32>
    %160 = arith.addf %157, %159 : vector<8x256xf32>
    %161 = arith.addf %15, %160 : vector<8x256xf32>
    %cst_57 = arith.constant 5.000000e-01 : f32
    %162 = vector.broadcast %cst_57 : f32 to vector<8x256xf32>
    %163 = arith.mulf %162, %161 : vector<8x256xf32>
    %cst_58 = arith.constant 0.707106769 : f32
    %164 = vector.broadcast %cst_58 : f32 to vector<8x256xf32>
    %165 = arith.mulf %161, %164 : vector<8x256xf32>
    %cst_59 = arith.constant 0.000000e+00 : f32
    %166 = vector.broadcast %cst_59 : f32 to vector<8x256xf32>
    %167 = arith.cmpf oge, %165, %166 : vector<8x256xf32>
    %cst_60 = arith.constant 1.000000e+00 : f32
    %cst_61 = arith.constant -1.000000e+00 : f32
    %168 = vector.broadcast %cst_60 : f32 to vector<8x256xf32>
    %169 = vector.broadcast %cst_61 : f32 to vector<8x256xf32>
    %170 = arith.select %167, %168, %169 : vector<8x256xi1>, vector<8x256xf32>
    %171 = math.absf %165 : vector<8x256xf32>
    %cst_62 = arith.constant 0.327591091 : f32
    %172 = vector.broadcast %cst_62 : f32 to vector<8x256xf32>
    %173 = arith.mulf %172, %171 : vector<8x256xf32>
    %cst_63 = arith.constant 1.000000e+00 : f32
    %174 = vector.broadcast %cst_63 : f32 to vector<8x256xf32>
    %175 = arith.addf %174, %173 : vector<8x256xf32>
    %cst_64 = arith.constant 1.000000e+00 : f32
    %176 = vector.broadcast %cst_64 : f32 to vector<8x256xf32>
    %177 = arith.divf %176, %175 : vector<8x256xf32>
    %cst_65 = arith.constant 1.06140542 : f32
    %178 = vector.broadcast %cst_65 : f32 to vector<8x256xf32>
    %179 = arith.mulf %178, %177 : vector<8x256xf32>
    %cst_66 = arith.constant -1.45315206 : f32
    %180 = vector.broadcast %cst_66 : f32 to vector<8x256xf32>
    %181 = arith.addf %179, %180 : vector<8x256xf32>
    %182 = arith.mulf %181, %177 : vector<8x256xf32>
    %cst_67 = arith.constant 1.42141378 : f32
    %183 = vector.broadcast %cst_67 : f32 to vector<8x256xf32>
    %184 = arith.addf %182, %183 : vector<8x256xf32>
    %185 = arith.mulf %184, %177 : vector<8x256xf32>
    %cst_68 = arith.constant -0.284496725 : f32
    %186 = vector.broadcast %cst_68 : f32 to vector<8x256xf32>
    %187 = arith.addf %185, %186 : vector<8x256xf32>
    %188 = arith.mulf %187, %177 : vector<8x256xf32>
    %cst_69 = arith.constant 0.254829586 : f32
    %189 = vector.broadcast %cst_69 : f32 to vector<8x256xf32>
    %190 = arith.addf %188, %189 : vector<8x256xf32>
    %191 = arith.mulf %190, %177 : vector<8x256xf32>
    %cst_70 = arith.constant 0.000000e+00 : f32
    %192 = vector.broadcast %cst_70 : f32 to vector<8x256xf32>
    %193 = arith.subf %192, %171 : vector<8x256xf32>
    %194 = arith.mulf %193, %171 : vector<8x256xf32>
    %195 = math.exp %194 : vector<8x256xf32>
    %196 = arith.mulf %191, %195 : vector<8x256xf32>
    %cst_71 = arith.constant 1.000000e+00 : f32
    %197 = vector.broadcast %cst_71 : f32 to vector<8x256xf32>
    %198 = arith.subf %197, %196 : vector<8x256xf32>
    %199 = arith.mulf %170, %198 : vector<8x256xf32>
    %cst_72 = arith.constant 1.000000e+00 : f32
    %200 = vector.broadcast %cst_72 : f32 to vector<8x256xf32>
    %201 = arith.addf %200, %199 : vector<8x256xf32>
    %202 = arith.mulf %163, %201 : vector<8x256xf32>
    %c17_i32_73 = arith.constant 17 : i32
    %203 = tpu.dynamic_rotate %202 by %c17_i32_73 dim 1 : vector<8x256xf32>, i32 -> vector<8x256xf32>
    %204 = vector.broadcast %1 : vector<1x256xf32> to vector<8x256xf32>
    %205 = arith.mulf %203, %204 : vector<8x256xf32>
    %c16_i32_74 = arith.constant 16 : i32
    %206 = tpu.dynamic_rotate %202 by %c16_i32_74 dim 1 : vector<8x256xf32>, i32 -> vector<8x256xf32>
    %207 = vector.broadcast %2 : vector<1x256xf32> to vector<8x256xf32>
    %208 = arith.mulf %206, %207 : vector<8x256xf32>
    %c15_i32_75 = arith.constant 15 : i32
    %209 = tpu.dynamic_rotate %202 by %c15_i32_75 dim 1 : vector<8x256xf32>, i32 -> vector<8x256xf32>
    %210 = vector.broadcast %3 : vector<1x256xf32> to vector<8x256xf32>
    %211 = arith.mulf %209, %210 : vector<8x256xf32>
    %c1_i32_76 = arith.constant 1 : i32
    %212 = tpu.dynamic_rotate %202 by %c1_i32_76 dim 1 : vector<8x256xf32>, i32 -> vector<8x256xf32>
    %213 = vector.broadcast %4 : vector<1x256xf32> to vector<8x256xf32>
    %214 = arith.mulf %212, %213 : vector<8x256xf32>
    %c255_i32_77 = arith.constant 255 : i32
    %215 = tpu.dynamic_rotate %202 by %c255_i32_77 dim 1 : vector<8x256xf32>, i32 -> vector<8x256xf32>
    %216 = vector.broadcast %5 : vector<1x256xf32> to vector<8x256xf32>
    %217 = arith.mulf %215, %216 : vector<8x256xf32>
    %c241_i32_78 = arith.constant 241 : i32
    %218 = tpu.dynamic_rotate %202 by %c241_i32_78 dim 1 : vector<8x256xf32>, i32 -> vector<8x256xf32>
    %219 = vector.broadcast %6 : vector<1x256xf32> to vector<8x256xf32>
    %220 = arith.mulf %218, %219 : vector<8x256xf32>
    %c240_i32_79 = arith.constant 240 : i32
    %221 = tpu.dynamic_rotate %202 by %c240_i32_79 dim 1 : vector<8x256xf32>, i32 -> vector<8x256xf32>
    %222 = vector.broadcast %7 : vector<1x256xf32> to vector<8x256xf32>
    %223 = arith.mulf %221, %222 : vector<8x256xf32>
    %c239_i32_80 = arith.constant 239 : i32
    %224 = tpu.dynamic_rotate %202 by %c239_i32_80 dim 1 : vector<8x256xf32>, i32 -> vector<8x256xf32>
    %225 = vector.broadcast %8 : vector<1x256xf32> to vector<8x256xf32>
    %226 = arith.mulf %224, %225 : vector<8x256xf32>
    %227 = tpu.concatenate %205, %208, %211, %214, %202, %217, %220, %223, %226 in 0 : vector<8x256xf32>, vector<8x256xf32>, vector<8x256xf32>, vector<8x256xf32>, vector<8x256xf32>, vector<8x256xf32>, vector<8x256xf32>, vector<8x256xf32>, vector<8x256xf32> -> vector<72x256xf32>
    %c0_81 = arith.constant 0 : index
    %c0_82 = arith.constant 0 : index
    %228 = vector.load %arg13[%c0_81, %c0_82] : memref<4x72xf32, #tpu.memory_space<vmem>>, vector<4x72xf32>
    %cst_83 = arith.constant dense<0.000000e+00> : vector<4x256xf32>
    %229 = tpu.matmul %228, %227, %cst_83 {dimension_numbers = #tpu.dot_dimension_numbers<[1], [0], [0], [1], [0, 0, 1, 1], [], []>} : vector<4x72xf32>, vector<72x256xf32>, vector<4x256xf32> -> vector<4x256xf32>
    %230 = vector.shape_cast %229 : vector<4x256xf32> to vector<1x4x256xf32>
    %cst_84 = arith.constant dense<0.000000e+00> : vector<1xf32>
    %231 = vector.multi_reduction <add>, %230, %cst_84 [1, 2] : vector<1x4x256xf32> to vector<1xf32>
    %232 = vector.shape_cast %231 : vector<1xf32> to vector<1x1x1xf32>
    %233 = vector.extract %232[0, 0, 0] : f32 from vector<1x1x1xf32>
    %234 = arith.mulf %229, %229 : vector<4x256xf32>
    %235 = vector.shape_cast %234 : vector<4x256xf32> to vector<1x4x256xf32>
    %cst_85 = arith.constant dense<0.000000e+00> : vector<1xf32>
    %236 = vector.multi_reduction <add>, %235, %cst_85 [1, 2] : vector<1x4x256xf32> to vector<1xf32>
    %237 = vector.shape_cast %236 : vector<1xf32> to vector<1x1x1xf32>
    %238 = vector.extract %237[0, 0, 0] : f32 from vector<1x1x1xf32>
    %cst_86 = arith.constant 1.024000e+03 : f32
    %239 = arith.divf %233, %cst_86 : f32
    %cst_87 = arith.constant 1.024000e+03 : f32
    %240 = arith.divf %238, %cst_87 : f32
    %241 = arith.mulf %239, %239 : f32
    %242 = arith.subf %240, %241 : f32
    %243 = vector.broadcast %239 : f32 to vector<4x256xf32>
    %244 = arith.subf %229, %243 : vector<4x256xf32>
    %cst_88 = arith.constant 9.99999974E-6 : f32
    %245 = arith.addf %242, %cst_88 : f32
    %246 = math.rsqrt %245 : f32
    %247 = vector.broadcast %246 : f32 to vector<4x256xf32>
    %248 = arith.mulf %244, %247 : vector<4x256xf32>
    %c0_89 = arith.constant 0 : index
    %c0_90 = arith.constant 0 : index
    %249 = vector.load %arg14[%c0_89, %c0_90] : memref<4x1xf32, #tpu.memory_space<vmem>>, vector<4x1xf32>
    %250 = vector.broadcast %249 : vector<4x1xf32> to vector<4x256xf32>
    %251 = arith.mulf %248, %250 : vector<4x256xf32>
    %c0_91 = arith.constant 0 : index
    %c0_92 = arith.constant 0 : index
    %252 = vector.load %arg15[%c0_91, %c0_92] : memref<4x1xf32, #tpu.memory_space<vmem>>, vector<4x1xf32>
    %253 = vector.broadcast %252 : vector<4x1xf32> to vector<4x256xf32>
    %254 = arith.addf %251, %253 : vector<4x256xf32>
    %cst_93 = arith.constant 5.000000e-01 : f32
    %255 = vector.broadcast %cst_93 : f32 to vector<4x256xf32>
    %256 = arith.mulf %255, %254 : vector<4x256xf32>
    %cst_94 = arith.constant 0.707106769 : f32
    %257 = vector.broadcast %cst_94 : f32 to vector<4x256xf32>
    %258 = arith.mulf %254, %257 : vector<4x256xf32>
    %cst_95 = arith.constant 0.000000e+00 : f32
    %259 = vector.broadcast %cst_95 : f32 to vector<4x256xf32>
    %260 = arith.cmpf oge, %258, %259 : vector<4x256xf32>
    %cst_96 = arith.constant 1.000000e+00 : f32
    %cst_97 = arith.constant -1.000000e+00 : f32
    %261 = vector.broadcast %cst_96 : f32 to vector<4x256xf32>
    %262 = vector.broadcast %cst_97 : f32 to vector<4x256xf32>
    %263 = arith.select %260, %261, %262 : vector<4x256xi1>, vector<4x256xf32>
    %264 = math.absf %258 : vector<4x256xf32>
    %cst_98 = arith.constant 0.327591091 : f32
    %265 = vector.broadcast %cst_98 : f32 to vector<4x256xf32>
    %266 = arith.mulf %265, %264 : vector<4x256xf32>
    %cst_99 = arith.constant 1.000000e+00 : f32
    %267 = vector.broadcast %cst_99 : f32 to vector<4x256xf32>
    %268 = arith.addf %267, %266 : vector<4x256xf32>
    %cst_100 = arith.constant 1.000000e+00 : f32
    %269 = vector.broadcast %cst_100 : f32 to vector<4x256xf32>
    %270 = arith.divf %269, %268 : vector<4x256xf32>
    %cst_101 = arith.constant 1.06140542 : f32
    %271 = vector.broadcast %cst_101 : f32 to vector<4x256xf32>
    %272 = arith.mulf %271, %270 : vector<4x256xf32>
    %cst_102 = arith.constant -1.45315206 : f32
    %273 = vector.broadcast %cst_102 : f32 to vector<4x256xf32>
    %274 = arith.addf %272, %273 : vector<4x256xf32>
    %275 = arith.mulf %274, %270 : vector<4x256xf32>
    %cst_103 = arith.constant 1.42141378 : f32
    %276 = vector.broadcast %cst_103 : f32 to vector<4x256xf32>
    %277 = arith.addf %275, %276 : vector<4x256xf32>
    %278 = arith.mulf %277, %270 : vector<4x256xf32>
    %cst_104 = arith.constant -0.284496725 : f32
    %279 = vector.broadcast %cst_104 : f32 to vector<4x256xf32>
    %280 = arith.addf %278, %279 : vector<4x256xf32>
    %281 = arith.mulf %280, %270 : vector<4x256xf32>
    %cst_105 = arith.constant 0.254829586 : f32
    %282 = vector.broadcast %cst_105 : f32 to vector<4x256xf32>
    %283 = arith.addf %281, %282 : vector<4x256xf32>
    %284 = arith.mulf %283, %270 : vector<4x256xf32>
    %cst_106 = arith.constant 0.000000e+00 : f32
    %285 = vector.broadcast %cst_106 : f32 to vector<4x256xf32>
    %286 = arith.subf %285, %264 : vector<4x256xf32>
    %287 = arith.mulf %286, %264 : vector<4x256xf32>
    %288 = math.exp %287 : vector<4x256xf32>
    %289 = arith.mulf %284, %288 : vector<4x256xf32>
    %cst_107 = arith.constant 1.000000e+00 : f32
    %290 = vector.broadcast %cst_107 : f32 to vector<4x256xf32>
    %291 = arith.subf %290, %289 : vector<4x256xf32>
    %292 = arith.mulf %263, %291 : vector<4x256xf32>
    %cst_108 = arith.constant 1.000000e+00 : f32
    %293 = vector.broadcast %cst_108 : f32 to vector<4x256xf32>
    %294 = arith.addf %293, %292 : vector<4x256xf32>
    %295 = arith.mulf %256, %294 : vector<4x256xf32>
    %c17_i32_109 = arith.constant 17 : i32
    %296 = tpu.dynamic_rotate %295 by %c17_i32_109 dim 1 : vector<4x256xf32>, i32 -> vector<4x256xf32>
    %297 = vector.broadcast %1 : vector<1x256xf32> to vector<4x256xf32>
    %298 = arith.mulf %296, %297 : vector<4x256xf32>
    %c16_i32_110 = arith.constant 16 : i32
    %299 = tpu.dynamic_rotate %295 by %c16_i32_110 dim 1 : vector<4x256xf32>, i32 -> vector<4x256xf32>
    %300 = vector.broadcast %2 : vector<1x256xf32> to vector<4x256xf32>
    %301 = arith.mulf %299, %300 : vector<4x256xf32>
    %c15_i32_111 = arith.constant 15 : i32
    %302 = tpu.dynamic_rotate %295 by %c15_i32_111 dim 1 : vector<4x256xf32>, i32 -> vector<4x256xf32>
    %303 = vector.broadcast %3 : vector<1x256xf32> to vector<4x256xf32>
    %304 = arith.mulf %302, %303 : vector<4x256xf32>
    %c1_i32_112 = arith.constant 1 : i32
    %305 = tpu.dynamic_rotate %295 by %c1_i32_112 dim 1 : vector<4x256xf32>, i32 -> vector<4x256xf32>
    %306 = vector.broadcast %4 : vector<1x256xf32> to vector<4x256xf32>
    %307 = arith.mulf %305, %306 : vector<4x256xf32>
    %c255_i32_113 = arith.constant 255 : i32
    %308 = tpu.dynamic_rotate %295 by %c255_i32_113 dim 1 : vector<4x256xf32>, i32 -> vector<4x256xf32>
    %309 = vector.broadcast %5 : vector<1x256xf32> to vector<4x256xf32>
    %310 = arith.mulf %308, %309 : vector<4x256xf32>
    %c241_i32_114 = arith.constant 241 : i32
    %311 = tpu.dynamic_rotate %295 by %c241_i32_114 dim 1 : vector<4x256xf32>, i32 -> vector<4x256xf32>
    %312 = vector.broadcast %6 : vector<1x256xf32> to vector<4x256xf32>
    %313 = arith.mulf %311, %312 : vector<4x256xf32>
    %c240_i32_115 = arith.constant 240 : i32
    %314 = tpu.dynamic_rotate %295 by %c240_i32_115 dim 1 : vector<4x256xf32>, i32 -> vector<4x256xf32>
    %315 = vector.broadcast %7 : vector<1x256xf32> to vector<4x256xf32>
    %316 = arith.mulf %314, %315 : vector<4x256xf32>
    %c239_i32_116 = arith.constant 239 : i32
    %317 = tpu.dynamic_rotate %295 by %c239_i32_116 dim 1 : vector<4x256xf32>, i32 -> vector<4x256xf32>
    %318 = vector.broadcast %8 : vector<1x256xf32> to vector<4x256xf32>
    %319 = arith.mulf %317, %318 : vector<4x256xf32>
    %320 = tpu.concatenate %298, %301, %304, %307, %295, %310, %313, %316, %319 in 0 : vector<4x256xf32>, vector<4x256xf32>, vector<4x256xf32>, vector<4x256xf32>, vector<4x256xf32>, vector<4x256xf32>, vector<4x256xf32>, vector<4x256xf32>, vector<4x256xf32> -> vector<36x256xf32>
    %c0_117 = arith.constant 0 : index
    %c0_118 = arith.constant 0 : index
    %321 = vector.load %arg16[%c0_117, %c0_118] : memref<9x36xf32, #tpu.memory_space<vmem>>, vector<9x36xf32>
    %cst_119 = arith.constant dense<0.000000e+00> : vector<9x256xf32>
    %322 = tpu.matmul %321, %320, %cst_119 {dimension_numbers = #tpu.dot_dimension_numbers<[1], [0], [0], [1], [0, 0, 1, 1], [], []>} : vector<9x36xf32>, vector<36x256xf32>, vector<9x256xf32> -> vector<9x256xf32>
    %323 = vector.shape_cast %322 : vector<9x256xf32> to vector<1x9x256xf32>
    %cst_120 = arith.constant dense<0.000000e+00> : vector<1xf32>
    %324 = vector.multi_reduction <add>, %323, %cst_120 [1, 2] : vector<1x9x256xf32> to vector<1xf32>
    %325 = vector.shape_cast %324 : vector<1xf32> to vector<1x1x1xf32>
    %326 = vector.extract %325[0, 0, 0] : f32 from vector<1x1x1xf32>
    %327 = arith.mulf %322, %322 : vector<9x256xf32>
    %328 = vector.shape_cast %327 : vector<9x256xf32> to vector<1x9x256xf32>
    %cst_121 = arith.constant dense<0.000000e+00> : vector<1xf32>
    %329 = vector.multi_reduction <add>, %328, %cst_121 [1, 2] : vector<1x9x256xf32> to vector<1xf32>
    %330 = vector.shape_cast %329 : vector<1xf32> to vector<1x1x1xf32>
    %331 = vector.extract %330[0, 0, 0] : f32 from vector<1x1x1xf32>
    %cst_122 = arith.constant 2.304000e+03 : f32
    %332 = arith.divf %326, %cst_122 : f32
    %cst_123 = arith.constant 2.304000e+03 : f32
    %333 = arith.divf %331, %cst_123 : f32
    %334 = arith.mulf %332, %332 : f32
    %335 = arith.subf %333, %334 : f32
    %336 = vector.broadcast %332 : f32 to vector<9x256xf32>
    %337 = arith.subf %322, %336 : vector<9x256xf32>
    %cst_124 = arith.constant 9.99999974E-6 : f32
    %338 = arith.addf %335, %cst_124 : f32
    %339 = math.rsqrt %338 : f32
    %340 = vector.broadcast %339 : f32 to vector<9x256xf32>
    %341 = arith.mulf %337, %340 : vector<9x256xf32>
    %c0_125 = arith.constant 0 : index
    %c0_126 = arith.constant 0 : index
    %342 = vector.load %arg17[%c0_125, %c0_126] : memref<9x1xf32, #tpu.memory_space<vmem>>, vector<9x1xf32>
    %343 = vector.broadcast %342 : vector<9x1xf32> to vector<9x256xf32>
    %344 = arith.mulf %341, %343 : vector<9x256xf32>
    %c0_127 = arith.constant 0 : index
    %c0_128 = arith.constant 0 : index
    %345 = vector.load %arg18[%c0_127, %c0_128] : memref<9x1xf32, #tpu.memory_space<vmem>>, vector<9x1xf32>
    %346 = vector.broadcast %345 : vector<9x1xf32> to vector<9x256xf32>
    %347 = arith.addf %344, %346 : vector<9x256xf32>
    %c0_129 = arith.constant 0 : index
    %c0_130 = arith.constant 0 : index
    %c0_131 = arith.constant 0 : index
    %348 = vector.load %arg4[%c0_129, %c0_130, %c0_131] : memref<1x7x112xf32, #tpu.memory_space<vmem>>, vector<1x7x112xf32>
    %349 = vector.shape_cast %348 : vector<1x7x112xf32> to vector<7x112xf32>
    %c0_132 = arith.constant 0 : index
    %c0_133 = arith.constant 0 : index
    %350 = vector.load %arg19[%c0_132, %c0_133] : memref<112x256xf32, #tpu.memory_space<vmem>>, vector<112x256xf32>
    %cst_134 = arith.constant dense<0.000000e+00> : vector<7x256xf32>
    %351 = tpu.matmul %349, %350, %cst_134 {dimension_numbers = #tpu.dot_dimension_numbers<[1], [0], [0], [1], [0, 0, 1, 1], [], []>} : vector<7x112xf32>, vector<112x256xf32>, vector<7x256xf32> -> vector<7x256xf32>
    %c0_135 = arith.constant 0 : index
    %c0_136 = arith.constant 0 : index
    %352 = vector.load %arg20[%c0_135, %c0_136] : memref<7x256xf32, #tpu.memory_space<vmem>>, vector<7x256xf32>
    %353 = arith.addf %351, %352 : vector<7x256xf32>
    %c0_137 = arith.constant 0 : index
    %c0_138 = arith.constant 0 : index
    %c0_139 = arith.constant 0 : index
    %354 = vector.load %arg3[%c0_137, %c0_138, %c0_139] : memref<1x1x32xf32, #tpu.memory_space<vmem>>, vector<1x1x32xf32>
    %355 = vector.shape_cast %354 : vector<1x1x32xf32> to vector<1x32xf32>
    %356 = arith.negf %355 : vector<1x32xf32>
    %357 = math.exp %356 : vector<1x32xf32>
    %cst_140 = arith.constant 1.000000e+00 : f32
    %358 = vector.broadcast %cst_140 : f32 to vector<1x32xf32>
    %359 = arith.addf %358, %357 : vector<1x32xf32>
    %360 = arith.divf %358, %359 : vector<1x32xf32>
    %361 = arith.mulf %355, %360 : vector<1x32xf32>
    %c0_141 = arith.constant 0 : index
    %c0_142 = arith.constant 0 : index
    %362 = vector.load %arg21[%c0_141, %c0_142] : memref<16x32xf32, #tpu.memory_space<vmem>>, vector<16x32xf32>
    %363 = vector.broadcast %361 : vector<1x32xf32> to vector<16x32xf32>
    %364 = arith.mulf %362, %363 : vector<16x32xf32>
    %cst_143 = arith.constant dense<0.000000e+00> : vector<16xf32>
    %365 = vector.multi_reduction <add>, %364, %cst_143 [1] : vector<16x32xf32> to vector<16xf32>
    %366 = vector.shape_cast %365 : vector<16xf32> to vector<16x1xf32>
    %c0_144 = arith.constant 0 : index
    %c0_145 = arith.constant 0 : index
    %367 = vector.load %arg22[%c0_144, %c0_145] : memref<16x1xf32, #tpu.memory_space<vmem>>, vector<16x1xf32>
    %368 = arith.addf %366, %367 : vector<16x1xf32>
    %369 = vector.extract_strided_slice %368 {offsets = [0, 0], sizes = [9, 1], strides = [1, 1]} : vector<16x1xf32> to vector<9x1xf32>
    %370 = vector.broadcast %369 : vector<9x1xf32> to vector<9x256xf32>
    %371 = arith.addf %347, %370 : vector<9x256xf32>
    %372 = vector.extract_strided_slice %368 {offsets = [9, 0], sizes = [7, 1], strides = [1, 1]} : vector<16x1xf32> to vector<7x1xf32>
    %373 = vector.broadcast %372 : vector<7x1xf32> to vector<7x256xf32>
    %374 = arith.addf %353, %373 : vector<7x256xf32>
    %375 = tpu.concatenate %371, %374 in 0 : vector<9x256xf32>, vector<7x256xf32> -> vector<16x256xf32>
    %c0_146 = arith.constant 0 : index
    %c0_147 = arith.constant 0 : index
    %c0_148 = arith.constant 0 : index
    %376 = vector.load %arg23[%c0_146, %c0_147, %c0_148] : memref<1x16x256xf32, #tpu.memory_space<vmem>>, vector<1x16x256xf32>
    %377 = vector.shape_cast %376 : vector<1x16x256xf32> to vector<16x256xf32>
    %378 = vector.shape_cast %375 : vector<16x256xf32> to vector<1x16x256xf32>
    tpu.vector_store %arg23[%c0_146, %c0_147, %c0_148], %378 {strides = array<i32>} : memref<1x16x256xf32, #tpu.memory_space<vmem>>, vector<1x16x256xf32>,
    return
  }
  func.func @transform_0(%arg0: i32) -> (i32, i32, i32) {
    %c0_i32 = arith.constant 0 : i32
    %c0_i32_0 = arith.constant 0 : i32
    %c0_i32_1 = arith.constant 0 : i32
    return %arg0, %c0_i32, %c0_i32_0 : i32, i32, i32
  }
  func.func @transform_1(%arg0: i32) -> (i32, i32, i32) {
    %c0_i32 = arith.constant 0 : i32
    %c0_i32_0 = arith.constant 0 : i32
    %c0_i32_1 = arith.constant 0 : i32
    return %arg0, %c0_i32, %c0_i32_0 : i32, i32, i32
  }
  func.func @transform_2(%arg0: i32) -> (i32, i32, i32) {
    %c0_i32 = arith.constant 0 : i32
    %c0_i32_0 = arith.constant 0 : i32
    %c0_i32_1 = arith.constant 0 : i32
    return %arg0, %c0_i32, %c0_i32_0 : i32, i32, i32
  }
  func.func @transform_3(%arg0: i32) -> (i32, i32, i32) {
    %c0_i32 = arith.constant 0 : i32
    %c0_i32_0 = arith.constant 0 : i32
    %c0_i32_1 = arith.constant 0 : i32
    return %arg0, %c0_i32, %c0_i32_0 : i32, i32, i32
  }
  func.func @transform_4(%arg0: i32) -> (i32, i32) {
    %c0_i32 = arith.constant 0 : i32
    %c0_i32_0 = arith.constant 0 : i32
    %c0_i32_1 = arith.constant 0 : i32
    return %c0_i32, %c0_i32_0 : i32, i32
  }
  func.func @transform_5(%arg0: i32) -> (i32, i32) {
    %c0_i32 = arith.constant 0 : i32
    %c0_i32_0 = arith.constant 0 : i32
    %c0_i32_1 = arith.constant 0 : i32
    return %c0_i32, %c0_i32_0 : i32, i32
  }
  func.func @transform_6(%arg0: i32) -> (i32, i32) {
    %c0_i32 = arith.constant 0 : i32
    %c0_i32_0 = arith.constant 0 : i32
    %c0_i32_1 = arith.constant 0 : i32
    return %c0_i32, %c0_i32_0 : i32, i32
  }
  func.func @transform_7(%arg0: i32) -> (i32, i32) {
    %c0_i32 = arith.constant 0 : i32
    %c0_i32_0 = arith.constant 0 : i32
    %c0_i32_1 = arith.constant 0 : i32
    return %c0_i32, %c0_i32_0 : i32, i32
  }
  func.func @transform_8(%arg0: i32) -> (i32, i32) {
    %c0_i32 = arith.constant 0 : i32
    %c0_i32_0 = arith.constant 0 : i32
    %c0_i32_1 = arith.constant 0 : i32
    return %c0_i32, %c0_i32_0 : i32, i32
  }
  func.func @transform_9(%arg0: i32) -> (i32, i32) {
    %c0_i32 = arith.constant 0 : i32
    %c0_i32_0 = arith.constant 0 : i32
    %c0_i32_1 = arith.constant 0 : i32
    return %c0_i32, %c0_i32_0 : i32, i32
  }
  func.func @transform_10(%arg0: i32) -> (i32, i32) {
    %c0_i32 = arith.constant 0 : i32
    %c0_i32_0 = arith.constant 0 : i32
    %c0_i32_1 = arith.constant 0 : i32
    return %c0_i32, %c0_i32_0 : i32, i32
  }
  func.func @transform_11(%arg0: i32) -> (i32, i32) {
    %c0_i32 = arith.constant 0 : i32
    %c0_i32_0 = arith.constant 0 : i32
    %c0_i32_1 = arith.constant 0 : i32
    return %c0_i32, %c0_i32_0 : i32, i32
  }
  func.func @transform_12(%arg0: i32) -> (i32, i32) {
    %c0_i32 = arith.constant 0 : i32
    %c0_i32_0 = arith.constant 0 : i32
    %c0_i32_1 = arith.constant 0 : i32
    return %c0_i32, %c0_i32_0 : i32, i32
  }
  func.func @transform_13(%arg0: i32) -> (i32, i32) {
    %c0_i32 = arith.constant 0 : i32
    %c0_i32_0 = arith.constant 0 : i32
    %c0_i32_1 = arith.constant 0 : i32
    return %c0_i32, %c0_i32_0 : i32, i32
  }
  func.func @transform_14(%arg0: i32) -> (i32, i32) {
    %c0_i32 = arith.constant 0 : i32
    %c0_i32_0 = arith.constant 0 : i32
    %c0_i32_1 = arith.constant 0 : i32
    return %c0_i32, %c0_i32_0 : i32, i32
  }
  func.func @transform_15(%arg0: i32) -> (i32, i32) {
    %c0_i32 = arith.constant 0 : i32
    %c0_i32_0 = arith.constant 0 : i32
    %c0_i32_1 = arith.constant 0 : i32
    return %c0_i32, %c0_i32_0 : i32, i32
  }
  func.func @transform_16(%arg0: i32) -> (i32, i32) {
    %c0_i32 = arith.constant 0 : i32
    %c0_i32_0 = arith.constant 0 : i32
    %c0_i32_1 = arith.constant 0 : i32
    return %c0_i32, %c0_i32_0 : i32, i32
  }
  func.func @transform_17(%arg0: i32) -> (i32, i32) {
    %c0_i32 = arith.constant 0 : i32
    %c0_i32_0 = arith.constant 0 : i32
    %c0_i32_1 = arith.constant 0 : i32
    return %c0_i32, %c0_i32_0 : i32, i32
  }
  func.func @transform_18(%arg0: i32) -> (i32, i32) {
    %c0_i32 = arith.constant 0 : i32
    %c0_i32_0 = arith.constant 0 : i32
    %c0_i32_1 = arith.constant 0 : i32
    return %c0_i32, %c0_i32_0 : i32, i32
  }
  func.func @transform_19(%arg0: i32) -> (i32, i32) {
    %c0_i32 = arith.constant 0 : i32
    %c0_i32_0 = arith.constant 0 : i32
    %c0_i32_1 = arith.constant 0 : i32
    return %c0_i32, %c0_i32_0 : i32, i32
  }
  func.func @transform_20(%arg0: i32) -> (i32, i32) {
    %c0_i32 = arith.constant 0 : i32
    %c0_i32_0 = arith.constant 0 : i32
    %c0_i32_1 = arith.constant 0 : i32
    return %c0_i32, %c0_i32_0 : i32, i32
  }
  func.func @transform_21(%arg0: i32) -> (i32, i32) {
    %c0_i32 = arith.constant 0 : i32
    %c0_i32_0 = arith.constant 0 : i32
    %c0_i32_1 = arith.constant 0 : i32
    return %c0_i32, %c0_i32_0 : i32, i32
  }
  func.func @transform_22(%arg0: i32) -> (i32, i32, i32) {
    %c0_i32 = arith.constant 0 : i32
    %c0_i32_0 = arith.constant 0 : i32
    %c0_i32_1 = arith.constant 0 : i32
    return %arg0, %c0_i32, %c0_i32_0 : i32, i32, i32
  }
}

</mosaic_0001>

<bundles_post_ra>
// kernel: _up_forward.1
= control target key start
LH: loop header
LB: loop body
LE: loop exit
PB: predicated region body
PF: predicated region fallthrough
CT: control target
= control target key end

     0   :  { %s3182_s0 = inlined_call_operand.vmem [shape: f32[2,4,64], index: 0, kind: input, shape index: {}]   ;;  %s3183_s1 = inlined_call_operand.vmem [shape: f32[2,4,256], index: 1, kind: input, shape index: {}]   ;;  %s3184_s2 = inlined_call_operand.vmem [shape: f32[2,1,32], index: 2, kind: input, shape index: {}]   ;;  %s3185_s3 = inlined_call_operand.vmem [shape: f32[2,7,112], index: 3, kind: input, shape index: {}]   ;;  %s3186_s4 = inlined_call_operand.hbm [shape: f32[64,256], index: 4, kind: input, shape index: {}]   ;;  %s3187_s5 = inlined_call_operand.vmem [shape: f32[9,256], index: 5, kind: input, shape index: {}]   ;;  %s3188_s6 = inlined_call_operand.vmem [shape: f32[8,72], index: 6, kind: input, shape index: {}]   ;;  %s3189_s7 = inlined_call_operand.vmem [shape: f32[8,1], index: 7, kind: input, shape index: {}]   ;;  %s3190_s8 = inlined_call_operand.vmem [shape: f32[8,1], index: 8, kind: input, shape index: {}]   ;;  %s3191_s9 = inlined_call_operand.vmem [shape: f32[8,72], index: 9, kind: input, shape index: {}]   ;;  %s3192_s10 = inlined_call_operand.vmem [shape: f32[8,1], index: 10, kind: input, shape index: {}]   ;;  %s3193_s11 = inlined_call_operand.vmem [shape: f32[8,1], index: 11, kind: input, shape index: {}]   ;;  %s3194_s12 = inlined_call_operand.vmem [shape: f32[4,72], index: 12, kind: input, shape index: {}]   ;;  %s3195_s13 = inlined_call_operand.vmem [shape: f32[4,1], index: 13, kind: input, shape index: {}]   ;;  %s3196_s14 = inlined_call_operand.vmem [shape: f32[4,1], index: 14, kind: input, shape index: {}]   ;;  %s3197_s15 = inlined_call_operand.vmem [shape: f32[9,36], index: 15, kind: input, shape index: {}]   ;;  %s3198_s16 = inlined_call_operand.vmem [shape: f32[9,1], index: 16, kind: input, shape index: {}]   ;;  %s3199_s17 = inlined_call_operand.vmem [shape: f32[9,1], index: 17, kind: input, shape index: {}]   ;;  %s3200_s18 = inlined_call_operand.vmem [shape: f32[112,256], index: 18, kind: input, shape index: {}]   ;;  %s3201_s19 = inlined_call_operand.vmem [shape: f32[7,256], index: 19, kind: input, shape index: {}]   ;;  %s3202_s20 = inlined_call_operand.vmem [shape: f32[16,32], index: 20, kind: input, shape index: {}]   ;;  %s3203_s21 = inlined_call_operand.vmem [shape: f32[16,1], index: 21, kind: input, shape index: {}]   ;;  %s3204_s22 = inlined_call_operand.vmem [shape: f32[2,16,256], index: 22, kind: output, shape index: {}]  }
   0x1   :  { %3225 = sst [smem:[#allocation5_spill]] %s3182_s0 }
   0x2   :  { %3226 = sst [smem:[#allocation6_spill]] %s3183_s1 }
   0x3   :  { %3227 = sst [smem:[#allocation7_spill]] %s3184_s2 }
   0x4   :  { %3228 = sst [smem:[#allocation8_spill]] %s3185_s3 }
   0x5   :  { %3229 = sst [smem:[#allocation9_spill]] %s3186_s4 }
   0x6   :  { %3230 = sst [smem:[#allocation10_spill]] %s3187_s5 }
   0x7   :  { %3231 = sst [smem:[#allocation11_spill]] %s3188_s6 }
   0x8   :  { %3232 = sst [smem:[#allocation12_spill]] %s3189_s7 }
   0x9   :  { %3233 = sst [smem:[#allocation13_spill]] %s3190_s8 }
   0xa   :  { %3234 = sst [smem:[#allocation14_spill]] %s3191_s9 }
   0xb   :  { %3235 = sst [smem:[#allocation15_spill]] %s3192_s10 }
   0xc   :  { %27 = vsyncpa [#allocation3], 0  ;;  %s2487_s3 = smov 0  }
   0xd LB: > { %s3236_s30 = sld [smem:[#allocation9_spill]]  ;;  %s2167_s0 = sadd.s32 4294967295, %s2354_s3   ;;  %s2354_s3 = sphi %s2487_s3, %s33_s3  }
   0xe   : > { %p2169_p0 = scmp.ge.s32.totalorder %s2354_s3, 1  ;;  %p546_p1 = scmp.lt.s32.totalorder %s2354_s3, 3 }
   0xf   : > { %p2239_p2 = scmp.eq.s32.totalorder %s2167_s0, 0  ;;  %s2356_s23 = smov [#allocation2]  }
  0x10   : > { %p547_p3 = pnand %p2169_p0, %p546_p1  ;;  %s559_s1 = sshll.u32 %s2356_s23, 4  ;;  %s560_s1 = int_to_ptr.vmem [resolvable:$true] %s559_s1 }
  0x11   : > { %s2357_s5 = smov 256   ;;  %s2358_s24 = smov 16  }
  0x12   : > { %p2235_p4 = pneg %p547_p3  ;;  %654 = sbr.rel (%p547_p3) target bundleno = 2618 (0xa3a), region = 108 }
  0x13   : > { %s557_s4 = sshll.u32 %s3236_s30, 4  ;;  %s558_s4 = int_to_ptr.hbm [resolvable:$true] %s557_s4 }
  0x14   : > { %p2236_p5 = pnand %p2239_p2, %p2235_p4 }
  0x16   : > { %2238 = dma.hbm_to_vmem [thread:$0]  (!%p2236_p5), %s558_s4, 2048, %s560_s1, [#allocation3], %s2357_s5, %s2357_s5, %s2358_s24  }
  0x17   : > { %2349 = dma.done.wait (%p2239_p2), [#allocation3], 2048  }
  0x18   : > { %2351 = vsyncadd (%p2239_p2), [#allocation3], 4294965248  ;;  %p728_p6 = scmp.lt.s32.totalorder %s2167_s0, 1  ;;  %v768_v0 = vld [vmem:[#allocation2 + $0x70] sm:$0xff]  ;;  %v766_v1 = vld [vmem:[#allocation2 + $0x60] sm:$0xff]  ;;  %s3237_s2 = sld [smem:[#allocation6_spill]]  ;;  %v834_v28 = vlaneseq }
  0x19   : > { %782 = vmatpush.msra.mxu0 %v768_v0  ;;  %v769_v2 = vld [vmem:[#allocation2 + $0x78] sm:$0xff]  ;;  %v764_v3 = vld [vmem:[#allocation2 + $0x50] sm:$0xff]  ;;  %v767_v4 = vld [vmem:[#allocation2 + $0x68] sm:$0xff]  ;;  %s3238_s4 = sld [smem:[#allocation5_spill]]  ;;  %vm770_vm0 = vcmask 523264   ;;  %vm3215_vm1 = vcmask 1043456  }
  0x1a   : > { %s3275_s0 = smov (!%p728_p6, %s2167_s0), 1  ;;  %802 = vmatpush.msra.mxu1 %v769_v2  ;;  %v765_v5 = vld [vmem:[#allocation2 + $0x58] sm:$0xff]  ;;  %v762_v6 = vld [vmem:[#allocation2 + $0x40] sm:$0xff]  ;;  %v763_v8 = vld [vmem:[#allocation2 + $0x48] sm:$0xff]  ;;  %s3211_s1 = smov 113   ;;  %v2548_v30 = vand.u32 127, %v834_v28 }
  0x1b   : > { %s3206_s6 = sshll.u32 %s3275_s0, 3  ;;  %783 = vmatpush.msra.mxu0 %v766_v1  ;;  %v760_v9 = vld [vmem:[#allocation2 + $0x30] sm:$0xff]  ;;  %s2174_s28 = sshll.u32 %s3275_s0, 2  ;;  %v761_v10 = vld [vmem:[#allocation2 + $0x38] sm:$0xff]  ;;  %v758_v11 = vld [vmem:[#allocation2 + $0x20] sm:$0xff]  ;;  %vm3216_vm10 = vcmask 588800  }
  0x1c   : > { %803 = vmatpush.msra.mxu1 %v767_v4  ;;  %v759_v12 = vld [vmem:[#allocation2 + $0x28] sm:$0xff]  ;;  %v756_v13 = vld [vmem:[#allocation2 + $0x10] sm:$0xff]  ;;  %v757_v14 = vld [vmem:[#allocation2 + $0x18] sm:$0xff]  ;;  %s3217_s5 = smov 112   ;;  %s3223_s24 = smov 111   ;;  %vm902_vm2 = vcmp.lt.s32.totalorder %v2548_v30, 112 }
  0x1d   : > { %784 = vmatpush.msra.mxu0 %v764_v3  ;;  %v754_v15 = vld [vmem:[#allocation2] sm:$0xff]  ;;  %v755_v17 = vld [vmem:[#allocation2 + $0x8] sm:$0xff]  ;;  %s3221_s25 = smov 1   ;;  %s3219_s26 = smov 127   ;;  %vm913_vm3 = vcmp.lt.s32.totalorder %v2548_v30, 111  ;;  %vm891_vm4 = vcmp.lt.s32.totalorder %v2548_v30, 113 }
  0x1e   : > { %s736_s27 = scalar_lea.vmem %s3237_s2, %s3206_s6  ;;  %804 = vmatpush.msra.mxu1 %v765_v5  ;;  %s3213_s2 = smov 15   ;;  %vm880_vm5 = vcmp.lt.s32.totalorder %v2548_v30, 127  ;;  %vm858_vm6 = vcmp.lt.s32.totalorder %v2548_v30, 15  ;;  %vm869_vm7 = vcmp.lt.s32.totalorder %v2548_v30, 1  ;;  %vm847_vm8 = vcmp.lt.s32.totalorder %v2548_v30, 16 }
  0x1f   : > { %v814_v7 = vld [vmem:[%s736_s27] sm:$0xff]  ;;  %785 = vmatpush.msra.mxu0 %v762_v6  ;;  %s731_s23 = scalar_lea.vmem %s3238_s4, %s2174_s28  ;;  %s3207_s27 = smov 17   ;;  %vm836_vm9 = vcmp.lt.s32.totalorder %v2548_v30, 17 }
  0x20   : > { %816 = vst [vmem:[#allocation1] ss:$2 sm:$0xff] %v814_v7  ;;  %805 = vmatpush.msra.mxu1 %v763_v8  ;;  %v753_v16 = vld [vmem:[%s731_s23] sm:$0xf]  ;;  %s3209_s28 = smov 16   ;;  %s3239_s4 = sld [smem:[#allocation10_spill]] }
  0x21   : > { %786 = vmatpush.msra.mxu0 %v760_v9  ;;  %s3241_s7 = sld [smem:[#allocation12_spill]] }
  0x22   : > { %806 = vmatpush.msra.mxu1 %v761_v10  ;;  %s3242_s8 = sld [smem:[#allocation13_spill]] }
  0x23   : > { %787 = vmatpush.msra.mxu0 %v758_v11  ;;  %s3247_s10 = sld [smem:[#allocation15_spill]] }
  0x24   : > { %807 = vmatpush.msra.mxu1 %v759_v12  ;;  %s3248_s9 = sld [smem:[#allocation14_spill]] }
  0x25   : > { %788 = vmatpush.msra.mxu0 %v756_v13 }
  0x26   : > { %808 = vmatpush.msra.mxu1 %v757_v14  ;;  %v2555_v32 = vld [vmem:[%s3239_s4 + $0x10] ss:$0 sm:$0xff]  ;;  %v2560_v33 = vld [vmem:[%s3239_s4 + $0x18] ss:$0 sm:$0xff]  ;;  %v2565_v35 = vld [vmem:[%s3239_s4] sm:$0xff] }
  0x27   : > { %789 = vmatpush.msra.mxu0 %v754_v15  ;;  %v817_v19 = vld.sshfl [vmem:[#allocation1] sm:$0xff pattern:$0x75316420]  ;;  %v818_v24 = vld.sshfl [vmem:[#allocation1 + $0x8] sm:$0xff pattern:$0x75316420] }
  0x28   : > { %2180 = vmatmul.msk.f32.vlgmr.msra.gmra.mxu0 %vm770_vm0, %v753_v16  ;;  %809 = vmatpush.msra.mxu1 %v755_v17  ;;  %v2570_v36 = vld [vmem:[%s3239_s4 + $0x8] sm:$0xff]  ;;  %v2574_v38 = vperm.slane %v2565_v35, 7  ;;  %v2590_v46 = vperm.slane %v2565_v35, 6  ;;  %v2605_v55 = vperm.slane %v2565_v35, 5  ;;  %v2621_v63 = vperm.slane %v2565_v35, 3 }
  0x29   : > { %2181 = vmatmul.msk.f32.vlgmr.msra.gmra.mxu1 %vm770_vm0, %v753_v16  ;;  %v2577_v39 = vperm.slane %v2570_v36, 7  ;;  %v2593_v47 = vperm.slane %v2570_v36, 6  ;;  %v2608_v56 = vperm.slane %v2570_v36, 5  ;;  %v2624_v0 = vperm.slane %v2570_v36, 3 }
  0x2a   : > { %v2627_v4 = vperm.slane %v2565_v35, 2  ;;  %v2630_v5 = vperm.slane %v2570_v36, 2  ;;  %v2646_v14 = vperm.slane %v2565_v35, 1  ;;  %v2649_v15 = vperm.slane %v2570_v36, 1 }
  0xa5   : > { %v791_v18 = vpop.f32.mrf.mxu0 }
  0xa6   : > { %v823_v20 = vrot.slane %v791_v18, 4  ;;  %v811_v21 = vpop.f32.mrf.mxu1 }
  0xa7   : > { %v824_v23 = vrot.slane %v811_v21, 4 }
  0xa8   : > { %v2511_v22 = vsel %vm3215_vm1, %v817_v19, %v823_v20 }
  0xa9   : > { %887 = vrot.lane.b32.xlu2 %v2511_v22, %s3211_s1  ;;  %898 = vrot.lane.b32.xlu1 %v2511_v22, %s3217_s5  ;;  %v2520_v25 = vsel %vm3215_vm1, %v818_v24, %v824_v23  ;;  %v2659_v23 = vperm.slane %v2565_v35, 0  ;;  %v2662_v24 = vperm.slane %v2570_v36, 0 }
  0xaa   : > { %909 = vrot.lane.b32.xlu0 %v2511_v22, %s3223_s24 }
  0xb1   : > { %889 = vrot.lane.b32.xlu2 %v2520_v25, %s3211_s1  ;;  %900 = vrot.lane.b32.xlu1 %v2520_v25, %s3217_s5 }
  0xb2   : > { %911 = vrot.lane.b32.xlu0 %v2520_v25, %s3223_s24 }
  0xb9   : > { %865 = vrot.lane.b32.xlu2 %v2511_v22, %s3221_s25  ;;  %878 = vrot.lane.b32.xlu1 %v2520_v25, %s3219_s26 }
  0xba   : > { %876 = vrot.lane.b32.xlu0 %v2511_v22, %s3219_s26 }
  0xc1   : > { %856 = vrot.lane.b32.xlu2 %v2520_v25, %s3213_s2  ;;  %854 = vrot.lane.b32.xlu1 %v2511_v22, %s3213_s2  ;;  %s3240_s2 = sld [smem:[#allocation11_spill]] }
  0xc2   : > { %867 = vrot.lane.b32.xlu0 %v2520_v25, %s3221_s25 }
  0xc7   : > { %v920_v35 = vld [vmem:[%s3240_s2] sm:$0xff] }
  0xc9   : > { %830 = vrot.lane.b32.xlu2 %v2511_v22, %s3207_s27  ;;  %845 = vrot.lane.b32.xlu1 %v2520_v25, %s3209_s28 }
  0xca   : > { %843 = vrot.lane.b32.xlu0 %v2511_v22, %s3209_s28 }
  0xd2   : > { %832 = vrot.lane.b32.xlu0 %v2520_v25, %s3207_s27 }
 0x103   : > { %v888_v26 = vpop.permute.xlu2 %887 }
 0x10b   : > { %v890_v31 = vpop.permute.xlu2 %889 }
 0x10c   : > { %v892_v48 = vsel %vm891_vm4, %v888_v26, %v890_v31  ;;  %v893_v49 = vsel %vm891_vm4, %v890_v31, %v888_v26 }
 0x10d   : > { %v896_v53 = vmul.f32 %v2590_v46, %v892_v48  ;;  %v897_v54 = vmul.f32 %v2593_v47, %v893_v49  ;;  %v2368_v48 = vmov 2048.0   ;;  %v1034_v49 = vld [vmem:[%s3242_s8] sm:$0xff] }
 0x10e   : > { %2270 = vrcp.f32 %v2368_v48 }
 0x113   : > { %v866_v52 = vpop.permute.xlu2 %865 }
 0x11b   : > { %v899_v27 = vpop.permute.xlu1 %898  ;;  %v857_v2 = vpop.permute.xlu2 %856 }
 0x11c   : > { %v910_v29 = vpop.permute.xlu0 %909 }
 0x123   : > { %v901_v34 = vpop.permute.xlu1 %900  ;;  %v831_v26 = vpop.permute.xlu2 %830 }
 0x124   : > { %v912_v37 = vpop.permute.xlu0 %911  ;;  %v903_v40 = vsel %vm902_vm2, %v899_v27, %v901_v34  ;;  %v904_v41 = vsel %vm902_vm2, %v901_v34, %v899_v27 }
 0x125   : > { %v914_v42 = vsel %vm913_vm3, %v910_v29, %v912_v37  ;;  %v915_v43 = vsel %vm913_vm3, %v912_v37, %v910_v29  ;;  %v907_v50 = vmul.f32 %v2574_v38, %v903_v40  ;;  %v908_v51 = vmul.f32 %v2577_v39, %v904_v41 }
 0x126   : > { %v918_v44 = vmul.f32 %v2555_v32, %v914_v42  ;;  %v919_v45 = vmul.f32 %v2560_v33, %v915_v43 }
 0x128   : > { %932 = vmatpush.msra.mxu2 %v918_v44  ;;  %952 = vmatpush.msra.mxu3 %v919_v45  ;;  %v2367_v44 = vmov 0   ;;  %v1026_v45 = vld [vmem:[%s3241_s7] sm:$0xff] }
 0x129   : > { %2265 = vset.pattern.permute.xlu0 %v2367_v44  ;;  %2266 = vset.pattern.permute.xlu1 %v2367_v44 }
 0x12a   : > { %933 = vmatpush.msra.mxu2 %v907_v50  ;;  %953 = vmatpush.msra.mxu3 %v908_v51  ;;  %v2271_v50 = vpop.eup %2270 }
 0x12b   : > { %v879_v57 = vpop.permute.xlu1 %878  ;;  %2267 = vset.pattern.permute.xlu2 %v2367_v44  ;;  %1029 = vperm.xlu0 %2265, %v1026_v45   ;;  %v988_v51 = vmul.f32 2048.0, %v2271_v50  ;;  %vm992_vm11 = vweird.f32 %v2271_v50 }
 0x12c   : > { %v877_v58 = vpop.permute.xlu0 %876  ;;  %934 = vmatpush.msra.mxu2 %v896_v53  ;;  %954 = vmatpush.msra.mxu3 %v897_v54 }
 0x12d   : > { %v881_v59 = vsel %vm880_vm5, %v877_v58, %v879_v57  ;;  %v882_v60 = vsel %vm880_vm5, %v879_v57, %v877_v58  ;;  %v989_v54 = vsub.f32 1.0, %v988_v51 }
 0x12e   : > { %v885_v61 = vmul.f32 %v2605_v55, %v881_v59  ;;  %v886_v62 = vmul.f32 %v2608_v56, %v882_v60 }
 0x130   : > { %935 = vmatpush.msra.mxu2 %v885_v61  ;;  %955 = vmatpush.msra.mxu3 %v886_v62  ;;  %v990_v62 = vmul.f32 %v2271_v50, %v989_v54 }
 0x132   : > { %936 = vmatpush.msra.mxu2 %v2511_v22  ;;  %956 = vmatpush.msra.mxu3 %v2520_v25 }
 0x133   : > { %v855_v1 = vpop.permute.xlu1 %854  ;;  %1037 = vperm.xlu0 %2265, %v1034_v49  }
 0x134   : > { %v868_v3 = vpop.permute.xlu0 %867  ;;  %v859_v6 = vsel %vm858_vm6, %v855_v1, %v857_v2  ;;  %v860_v7 = vsel %vm858_vm6, %v857_v2, %v855_v1 }
 0x135   : > { %v870_v8 = vsel %vm869_vm7, %v866_v52, %v868_v3  ;;  %v871_v9 = vsel %vm869_vm7, %v868_v3, %v866_v52  ;;  %v863_v12 = vmul.f32 %v2627_v4, %v860_v7  ;;  %v864_v13 = vmul.f32 %v2630_v5, %v859_v6 }
 0x136   : > { %v874_v10 = vmul.f32 %v2621_v63, %v871_v9  ;;  %v875_v11 = vmul.f32 %v2624_v0, %v870_v8  ;;  %v991_v7 = vadd.f32 %v2271_v50, %v990_v62 }
 0x138   : > { %937 = vmatpush.msra.mxu2 %v874_v10  ;;  %957 = vmatpush.msra.mxu3 %v875_v11  ;;  %v993_v11 = vsel %vm992_vm11, %v2271_v50, %v991_v7 }
 0x13a   : > { %938 = vmatpush.msra.mxu2 %v863_v12  ;;  %958 = vmatpush.msra.mxu3 %v864_v13 }
 0x13b   : > { %v846_v16 = vpop.permute.xlu1 %845 }
 0x13c   : > { %v844_v17 = vpop.permute.xlu0 %843 }
 0x13d   : > { %v848_v18 = vsel %vm847_vm8, %v844_v17, %v846_v16  ;;  %v849_v19 = vsel %vm847_vm8, %v846_v16, %v844_v17 }
 0x13e   : > { %v852_v20 = vmul.f32 %v2646_v14, %v849_v19  ;;  %v853_v21 = vmul.f32 %v2649_v15, %v848_v18 }
 0x140   : > { %939 = vmatpush.msra.mxu2 %v852_v20  ;;  %959 = vmatpush.msra.mxu3 %v853_v21 }
 0x144   : > { %v833_v27 = vpop.permute.xlu0 %832 }
 0x145   : > { %v837_v28 = vsel %vm836_vm9, %v831_v26, %v833_v27  ;;  %v838_v29 = vsel %vm836_vm9, %v833_v27, %v831_v26 }
 0x146   : > { %v841_v31 = vmul.f32 %v2659_v23, %v838_v29  ;;  %v842_v34 = vmul.f32 %v2662_v24, %v837_v28 }
 0x148   : > { %940 = vmatpush.msra.mxu2 %v841_v31  ;;  %960 = vmatpush.msra.mxu3 %v842_v34 }
 0x149   : > { %2182 = vmatmul.msk.f32.vlgmr.msra.gmra.mxu2 %vm3216_vm10, %v920_v35  ;;  %2183 = vmatmul.msk.f32.vlgmr.msra.gmra.mxu3 %vm3216_vm10, %v920_v35 }
 0x19d   : > { %v1030_v26 = vpop.permute.xlu0 %1029 }
 0x1cc   : > { %v2675_v36 = vpop.f32.mrf.mxu2  ;;  %v2677_v37 = vpop.f32.mrf.mxu3 }
 0x1cd   : > { %v965_v40 = vadd.f32 %v2677_v37, %v2675_v36  ;;  %v975_v41 = vmul.f32 %v2675_v36, %v2675_v36  ;;  %v976_v42 = vmul.f32 %v2677_v37, %v2677_v37 }
 0x1cf   : > { %966 = vadd.xlane.f32.xlu1 %v965_v40  ;;  %v977_v43 = vadd.f32 %v976_v42, %v975_v41  ;;  %v1038_v42 = vpop.permute.xlu0 %1037 }
 0x1d1   : > { %978 = vadd.xlane.f32.xlu2 %v977_v43 }
 0x242   : > { %v967_v52 = vpop.xlane.xlu1 %966 }
 0x243   : > { %v968_v53 = vrot.slane %v967_v52, 4 }
 0x244   : > { %v979_v57 = vpop.xlane.xlu2 %978 }
 0x245   : > { %v969_v58 = vadd.f32 %v968_v53, %v967_v52  ;;  %v980_v59 = vrot.slane %v979_v57, 4 }
 0x247   : > { %v970_v60 = vrot.slane %v969_v58, 2  ;;  %v981_v61 = vadd.f32 %v980_v59, %v979_v57 }
 0x249   : > { %v982_v1 = vrot.slane %v981_v61, 2  ;;  %v971_v2 = vadd.f32 %v970_v60, %v969_v58 }
 0x24b   : > { %v972_v3 = vrot.slane %v971_v2, 1  ;;  %v983_v6 = vadd.f32 %v982_v1, %v981_v61 }
 0x24d   : > { %v973_v8 = vadd.f32 %v972_v3, %v971_v2  ;;  %v984_v9 = vrot.slane %v983_v6, 1 }
 0x24f   : > { %2201 = vpush %v973_v8  ;;  %v985_v10 = vadd.f32 %v984_v9, %v983_v6 }
 0x251   : > { %2203 = vpush %v985_v10 }
 0x252   : > { %2205 = vpush %v993_v11 }
 0x280   : > { %s2202_s23 = spop %2201 }
 0x282   : > { %s2204_s6 = spop %2203 }
 0x283   : > { %s2691_s1 = spop %2205 }
 0x284   : > { %s995_s2 = smul.f32 %s2691_s1, %s2202_s23 }
 0x285   : > { %s1004_s27 = smul.f32 %s2691_s1, %s2204_s6  ;;  %s3243_s6 = smov 15  }
 0x286   : > { %s1005_s28 = smul.f32 %s995_s2, %s995_s2  ;;  %v1007_v27 = vstv %s995_s2  ;;  %s3244_s2 = smov 113  }
 0x287   : > { %v1008_v28 = vsub.f32 %v2675_v36, %v1007_v27  ;;  %v1009_v29 = vsub.f32 %v2677_v37, %v1007_v27 }
 0x288   : > { %s1006_s29 = ssub.f32 %s1004_s27, %s1005_s28  ;;  %s3245_s27 = smov 16  }
 0x289   : > { %s3246_s28 = smov 17  }
 0x28a   : > { %s1010_s30 = sadd.f32 1e-05, %s1006_s29 }
 0x28c   : > { %v1011_v12 = vstv %s1010_s30 }
 0x28d   : > { %2272 = vrsqrt.f32 %v1011_v12  ;;  %vm1018_vm13 = vweird.f32 %v1011_v12 }
 0x293   : > { %v2273_v13 = vpop.eup %2272 }
 0x294   : > { %v1013_v16 = vmul.f32 %v2273_v13, %v1011_v12  ;;  %vm1019_vm12 = vweird.f32 %v2273_v13 }
 0x295   : > { %vm1020_vm14 = vmor %vm1018_vm13, %vm1019_vm12 }
 0x296   : > { %v1014_v17 = vmul.f32 %v2273_v13, %v1013_v16 }
 0x298   : > { %v1015_v18 = vmul.f32 0.5, %v1014_v17 }
 0x29a   : > { %v1016_v19 = vsub.f32 1.5, %v1015_v18 }
 0x29c   : > { %v1017_v20 = vmul.f32 %v2273_v13, %v1016_v19 }
 0x29e   : > { %v1021_v21 = vsel %vm1020_vm14, %v2273_v13, %v1017_v20 }
 0x29f   : > { %2207 = vpush %v1021_v21 }
 0x2d0   : > { %s2208_s23 = spop %2207 }
 0x2d1   : > { %v1023_v31 = vstv %s2208_s23 }
 0x2d2   : > { %v1024_v34 = vmul.f32 %v1023_v31, %v1008_v28  ;;  %v1025_v35 = vmul.f32 %v1023_v31, %v1009_v29 }
 0x2d4   : > { %v1032_v40 = vmul.f32 %v1030_v26, %v1024_v34  ;;  %v1033_v41 = vmul.f32 %v1030_v26, %v1025_v35 }
 0x2d6   : > { %v2697_v43 = vadd.f32 %v1038_v42, %v1032_v40  ;;  %v2699_v44 = vadd.f32 %v1038_v42, %v1033_v41 }
 0x2d8   : > { %v2702_v45 = vmul.f32 0.70710677, %v2697_v43  ;;  %v2705_v48 = vmul.f32 0.70710677, %v2699_v44 }
 0x2da   : > { %v1050_v36 = vand.u32 2147483647, %v2702_v45  ;;  %v1051_v37 = vand.u32 2147483647, %v2705_v48 }
 0x2dc   : > { %v1052_v49 = vmul.f32 0.3275911, %v1050_v36  ;;  %v1053_v50 = vmul.f32 0.3275911, %v1051_v37  ;;  %v1104_v16 = vsub.f32 0.0, %v1050_v36  ;;  %v1105_v19 = vsub.f32 0.0, %v1051_v37 }
 0x2de   : > { %v1054_v51 = vadd.f32 1.0, %v1052_v49  ;;  %v1055_v52 = vadd.f32 1.0, %v1053_v50  ;;  %v1106_v27 = vmul.f32 %v1104_v16, %v1050_v36  ;;  %v1107_v29 = vmul.f32 %v1105_v19, %v1051_v37 }
 0x2e0   : > { %2274 = vrcp.f32 %v1054_v51  ;;  %v1067_v60 = vand.u32 2147483648, %v1054_v51  ;;  %v1065_v1 = vand.u32 2147483647, %v1054_v51  ;;  %v1082_v2 = vand.u32 2147483648, %v1055_v52 }
 0x2e1   : > { %2276 = vrcp.f32 %v1055_v52  ;;  %v1080_v6 = vand.u32 2147483647, %v1055_v52  ;;  %vm1061_vm11 = vweird.f32 %v1054_v51  ;;  %vm1076_vm13 = vweird.f32 %v1055_v52 }
 0x2e2   : > { %v1068_v8 = vor.u32 1.1754944e-38, %v1067_v60  ;;  %vm1066_vm14 = vcmp.eq.f32.partialorder %v1065_v1, 8.507059e+37  ;;  %v1083_v11 = vor.u32 1.1754944e-38, %v1082_v2  ;;  %v1108_v40 = vmul.f32 1.442695, %v1106_v27 }
 0x2e3   : > { %vm1081_vm10 = vcmp.eq.f32.partialorder %v1080_v6, 8.507059e+37  ;;  %v1110_v42 = vmul.f32 1.442695, %v1107_v29  ;;  %v2369_v1 = vmov -1.0  }
 0x2e4   : > { %2278 = vpow2.f32 %v1108_v40 }
 0x2e5   : > { %2280 = vpow2.f32 %v1110_v42 }
 0x2e6   : > { %v2275_v53 = vpop.eup %2274 }
 0x2e7   : > { %v2277_v54 = vpop.eup %2276  ;;  %v1057_v57 = vmul.f32 %v2275_v53, %v1054_v51  ;;  %vm1062_vm15 = vweird.f32 %v2275_v53 }
 0x2e8   : > { %v1072_v58 = vmul.f32 %v2277_v54, %v1055_v52  ;;  %vm1077_vm0 = vweird.f32 %v2277_v54  ;;  %vm1063_vm12 = vmor %vm1061_vm11, %vm1062_vm15  ;;  %vm3249_vm15 = vcmask 588800  }
 0x2e9   : > { %v1058_v59 = vsub.f32 1.0, %v1057_v57  ;;  %vm1078_vm1 = vmor %vm1076_vm13, %vm1077_vm0 }
 0x2ea   : > { %v1073_v61 = vsub.f32 1.0, %v1072_v58  ;;  %vm3250_vm0 = vmmov %vm3249_vm15 }
 0x2eb   : > { %v1059_v62 = vmul.f32 %v2275_v53, %v1058_v59  ;;  %v2279_v59 = vpop.eup %2278 }
 0x2ec   : > { %v1074_v3 = vmul.f32 %v2277_v54, %v1073_v61  ;;  %v2281_v60 = vpop.eup %2280 }
 0x2ed   : > { %v1060_v7 = vadd.f32 %v2275_v53, %v1059_v62 }
 0x2ee   : > { %v1075_v9 = vadd.f32 %v2277_v54, %v1074_v3 }
 0x2ef   : > { %v1064_v10 = vsel %vm1063_vm12, %v2275_v53, %v1060_v7 }
 0x2f0   : > { %v1069_v12 = vsel %vm1066_vm14, %v1068_v8, %v1064_v10  ;;  %v1079_v13 = vsel %vm1078_vm1, %v2277_v54, %v1075_v9  ;;  %vm1046_vm1 = vcmp.ge.f32.partialorder %v2702_v45, 0.0  ;;  %v1042_v9 = vmul.f32 0.5, %v2697_v43  ;;  %v1291_v43 = vld [vmem:[%s3247_s10] sm:$0xff] }
 0x2f1   : > { %v1084_v17 = vsel %vm1081_vm10, %v1083_v11, %v1079_v13  ;;  %v1086_v18 = vmul.f32 1.0614054, %v1069_v12  ;;  %vm1047_vm10 = vcmp.ge.f32.partialorder %v2705_v48, 0.0  ;;  %v1048_v2 = vsel %vm1046_vm1, 1.0, %v2369_v1 }
 0x2f2   : > { %v1087_v20 = vmul.f32 1.0614054, %v1084_v17  ;;  %v1049_v6 = vsel %vm1047_vm10, 1.0, %v2369_v1  ;;  %v1043_v11 = vmul.f32 0.5, %v2699_v44  ;;  %v1299_v44 = vld [vmem:[%s3193_s11] sm:$0xff] }
 0x2f3   : > { %v1088_v21 = vadd.f32 -1.4531521, %v1086_v18 }
 0x2f4   : > { %v1089_v26 = vadd.f32 -1.4531521, %v1087_v20 }
 0x2f5   : > { %v1090_v28 = vmul.f32 %v1088_v21, %v1069_v12 }
 0x2f6   : > { %v1091_v31 = vmul.f32 %v1089_v26, %v1084_v17 }
 0x2f7   : > { %v1092_v34 = vadd.f32 1.4214138, %v1090_v28 }
 0x2f8   : > { %v1093_v35 = vadd.f32 1.4214138, %v1091_v31 }
 0x2f9   : > { %v1094_v41 = vmul.f32 %v1092_v34, %v1069_v12 }
 0x2fa   : > { %v1095_v49 = vmul.f32 %v1093_v35, %v1084_v17 }
 0x2fb   : > { %v1096_v50 = vadd.f32 -0.28449672, %v1094_v41 }
 0x2fc   : > { %v1097_v51 = vadd.f32 -0.28449672, %v1095_v49 }
 0x2fd   : > { %v1098_v52 = vmul.f32 %v1096_v50, %v1069_v12 }
 0x2fe   : > { %v1099_v53 = vmul.f32 %v1097_v51, %v1084_v17 }
 0x2ff   : > { %v1100_v54 = vadd.f32 0.2548296, %v1098_v52 }
 0x300   : > { %v1101_v57 = vadd.f32 0.2548296, %v1099_v53 }
 0x301   : > { %v1102_v58 = vmul.f32 %v1100_v54, %v1069_v12 }
 0x302   : > { %v1103_v36 = vmul.f32 %v1101_v57, %v1084_v17 }
 0x303   : > { %v1112_v37 = vmul.f32 %v2279_v59, %v1102_v58 }
 0x304   : > { %v1113_v61 = vmul.f32 %v2281_v60, %v1103_v36 }
 0x305   : > { %v1114_v62 = vsub.f32 1.0, %v1112_v37 }
 0x306   : > { %v1115_v3 = vsub.f32 1.0, %v1113_v61 }
 0x307   : > { %v1116_v7 = vmul.f32 %v1114_v62, %v1048_v2 }
 0x308   : > { %v1117_v8 = vmul.f32 %v1115_v3, %v1049_v6 }
 0x309   : > { %v1118_v10 = vadd.f32 1.0, %v1116_v7 }
 0x30a   : > { %v1119_v12 = vadd.f32 1.0, %v1117_v8 }
 0x30b   : > { %v1120_v45 = vmul.f32 %v1118_v10, %v1042_v9 }
 0x30c   : > { %v1121_v13 = vmul.f32 %v1119_v12, %v1043_v11 }
 0x30d   : > { %1170 = vrot.lane.b32.xlu2 %v1120_v45, %s3217_s5  ;;  %1178 = vrot.lane.b32.xlu0 %v1120_v45, %s3223_s24 }
 0x30e   : > { %1172 = vrot.lane.b32.xlu1 %v1121_v13, %s3217_s5 }
 0x315   : > { %1156 = vrot.lane.b32.xlu2 %v1121_v13, %s3219_s26  ;;  %1180 = vrot.lane.b32.xlu0 %v1121_v13, %s3223_s24 }
 0x316   : > { %1146 = vrot.lane.b32.xlu1 %v1120_v45, %s3221_s25 }
 0x31d   : > { %1138 = vrot.lane.b32.xlu2 %v1120_v45, %s3243_s6  ;;  %1162 = vrot.lane.b32.xlu0 %v1120_v45, %s3244_s2 }
 0x31e   : > { %1140 = vrot.lane.b32.xlu1 %v1121_v13, %s3243_s6 }
 0x325   : > { %1132 = vrot.lane.b32.xlu2 %v1121_v13, %s3245_s27  ;;  %1164 = vrot.lane.b32.xlu0 %v1121_v13, %s3244_s2 }
 0x326   : > { %1122 = vrot.lane.b32.xlu1 %v1120_v45, %s3246_s28 }
 0x32d   : > { %1154 = vrot.lane.b32.xlu0 %v1120_v45, %s3219_s26 }
 0x335   : > { %1148 = vrot.lane.b32.xlu0 %v1121_v13, %s3221_s25 }
 0x33d   : > { %1130 = vrot.lane.b32.xlu0 %v1120_v45, %s3245_s27 }
 0x345   : > { %1124 = vrot.lane.b32.xlu0 %v1121_v13, %s3246_s28 }
 0x34d   : > { %1294 = vperm.xlu0 %2265, %v1291_v43  }
 0x355   : > { %1302 = vperm.xlu0 %2265, %v1299_v44  }
 0x367   : > { %v1171_v17 = vpop.permute.xlu2 %1170 }
 0x36f   : > { %v1157_v50 = vpop.permute.xlu2 %1156 }
 0x377   : > { %v1139_v59 = vpop.permute.xlu2 %1138 }
 0x37f   : > { %v1179_v48 = vpop.permute.xlu0 %1178  ;;  %v1133_v9 = vpop.permute.xlu2 %1132 }
 0x380   : > { %v1173_v16 = vpop.permute.xlu1 %1172 }
 0x381   : > { %v1174_v19 = vsel %vm902_vm2, %v1171_v17, %v1173_v16  ;;  %v1175_v20 = vsel %vm902_vm2, %v1173_v16, %v1171_v17 }
 0x382   : > { %v1176_v29 = vmul.f32 %v1174_v19, %v2574_v38  ;;  %v1177_v31 = vmul.f32 %v1175_v20, %v2577_v39  ;;  %v1186_v19 = vld [vmem:[%s3248_s9] sm:$0xff] }
 0x387   : > { %v1181_v18 = vpop.permute.xlu0 %1180 }
 0x388   : > { %v1182_v21 = vsel %vm913_vm3, %v1179_v48, %v1181_v18  ;;  %v1183_v26 = vsel %vm913_vm3, %v1181_v18, %v1179_v48  ;;  %v1147_v51 = vpop.permute.xlu1 %1146 }
 0x389   : > { %v1184_v27 = vmul.f32 %v2555_v32, %v1182_v21  ;;  %v1185_v28 = vmul.f32 %v2560_v33, %v1183_v26 }
 0x38b   : > { %1197 = vmatpush.msrb.mxu0 %v1184_v27  ;;  %1217 = vmatpush.msrb.mxu1 %v1185_v28 }
 0x38d   : > { %1198 = vmatpush.msrb.mxu0 %v1176_v29  ;;  %1218 = vmatpush.msrb.mxu1 %v1177_v31 }
 0x38f   : > { %v1163_v34 = vpop.permute.xlu0 %1162 }
 0x390   : > { %v1141_v36 = vpop.permute.xlu1 %1140 }
 0x391   : > { %v1142_v37 = vsel %vm858_vm6, %v1139_v59, %v1141_v36  ;;  %v1143_v61 = vsel %vm858_vm6, %v1141_v36, %v1139_v59 }
 0x392   : > { %v1144_v7 = vmul.f32 %v1143_v61, %v2627_v4  ;;  %v1145_v8 = vmul.f32 %v1142_v37, %v2630_v5 }
 0x397   : > { %v1165_v35 = vpop.permute.xlu0 %1164 }
 0x398   : > { %v1166_v40 = vsel %vm891_vm4, %v1163_v34, %v1165_v35  ;;  %v1167_v41 = vsel %vm891_vm4, %v1165_v35, %v1163_v34  ;;  %v1123_v43 = vpop.permute.xlu1 %1122 }
 0x399   : > { %v1168_v42 = vmul.f32 %v1166_v40, %v2590_v46  ;;  %v1169_v49 = vmul.f32 %v1167_v41, %v2593_v47 }
 0x39b   : > { %1199 = vmatpush.msrb.mxu0 %v1168_v42  ;;  %1219 = vmatpush.msrb.mxu1 %v1169_v49 }
 0x39f   : > { %v1155_v52 = vpop.permute.xlu0 %1154 }
 0x3a0   : > { %v1158_v53 = vsel %vm880_vm5, %v1155_v52, %v1157_v50  ;;  %v1159_v54 = vsel %vm880_vm5, %v1157_v50, %v1155_v52 }
 0x3a1   : > { %v1160_v57 = vmul.f32 %v1158_v53, %v2605_v55  ;;  %v1161_v58 = vmul.f32 %v1159_v54, %v2608_v56 }
 0x3a3   : > { %1200 = vmatpush.msrb.mxu0 %v1160_v57  ;;  %1220 = vmatpush.msrb.mxu1 %v1161_v58 }
 0x3a5   : > { %1201 = vmatpush.msrb.mxu0 %v1120_v45  ;;  %1221 = vmatpush.msrb.mxu1 %v1121_v13 }
 0x3a7   : > { %v1149_v60 = vpop.permute.xlu0 %1148 }
 0x3a8   : > { %v1150_v62 = vsel %vm869_vm7, %v1147_v51, %v1149_v60  ;;  %v1151_v2 = vsel %vm869_vm7, %v1149_v60, %v1147_v51 }
 0x3a9   : > { %v1152_v3 = vmul.f32 %v1151_v2, %v2621_v63  ;;  %v1153_v6 = vmul.f32 %v1150_v62, %v2624_v0 }
 0x3ab   : > { %1202 = vmatpush.msrb.mxu0 %v1152_v3  ;;  %1222 = vmatpush.msrb.mxu1 %v1153_v6 }
 0x3ad   : > { %1203 = vmatpush.msrb.mxu0 %v1144_v7  ;;  %1223 = vmatpush.msrb.mxu1 %v1145_v8 }
 0x3af   : > { %v1131_v10 = vpop.permute.xlu0 %1130 }
 0x3b0   : > { %v1134_v11 = vsel %vm847_vm8, %v1131_v10, %v1133_v9  ;;  %v1135_v12 = vsel %vm847_vm8, %v1133_v9, %v1131_v10 }
 0x3b1   : > { %v1136_v45 = vmul.f32 %v1135_v12, %v2646_v14  ;;  %v1137_v13 = vmul.f32 %v1134_v11, %v2649_v15 }
 0x3b3   : > { %1204 = vmatpush.msrb.mxu0 %v1136_v45  ;;  %1224 = vmatpush.msrb.mxu1 %v1137_v13 }
 0x3b7   : > { %v1125_v44 = vpop.permute.xlu0 %1124 }
 0x3b8   : > { %v1126_v48 = vsel %vm836_vm9, %v1123_v43, %v1125_v44  ;;  %v1127_v16 = vsel %vm836_vm9, %v1125_v44, %v1123_v43 }
 0x3b9   : > { %v1128_v17 = vmul.f32 %v1127_v16, %v2659_v23  ;;  %v1129_v18 = vmul.f32 %v1126_v48, %v2662_v24 }
 0x3bb   : > { %1205 = vmatpush.msrb.mxu0 %v1128_v17  ;;  %1225 = vmatpush.msrb.mxu1 %v1129_v18 }
 0x3bc   : > { %2184 = vmatmul.msk.f32.vlgmr.msrb.gmra.mxu0 %vm3249_vm15, %v1186_v19  ;;  %2185 = vmatmul.msk.f32.vlgmr.msrb.gmra.mxu1 %vm3250_vm0, %v1186_v19 }
 0x3bf   : > { %v1295_v6 = vpop.permute.xlu0 %1294 }
 0x3c7   : > { %v1303_v43 = vpop.permute.xlu0 %1302 }
 0x439   : > { %v1207_v20 = vpop.f32.mrf.mxu0  ;;  %v1227_v21 = vpop.f32.mrf.mxu1 }
 0x43a   : > { %v1230_v26 = vadd.f32 %v1227_v21, %v1207_v20  ;;  %v1240_v27 = vmul.f32 %v1207_v20, %v1207_v20  ;;  %v1241_v28 = vmul.f32 %v1227_v21, %v1227_v21 }
 0x43c   : > { %1231 = vadd.xlane.f32.xlu2 %v1230_v26  ;;  %v1242_v29 = vadd.f32 %v1241_v28, %v1240_v27 }
 0x43e   : > { %1243 = vadd.xlane.f32.xlu1 %v1242_v29 }
 0x4af   : > { %v1232_v31 = vpop.xlane.xlu2 %1231 }
 0x4b0   : > { %v1233_v34 = vrot.slane %v1232_v31, 4 }
 0x4b1   : > { %v1244_v35 = vpop.xlane.xlu1 %1243 }
 0x4b2   : > { %v1234_v40 = vadd.f32 %v1233_v34, %v1232_v31  ;;  %v1245_v41 = vrot.slane %v1244_v35, 4 }
 0x4b4   : > { %v1235_v42 = vrot.slane %v1234_v40, 2  ;;  %v1246_v49 = vadd.f32 %v1245_v41, %v1244_v35 }
 0x4b6   : > { %v1247_v50 = vrot.slane %v1246_v49, 2  ;;  %v1236_v51 = vadd.f32 %v1235_v42, %v1234_v40 }
 0x4b8   : > { %v1237_v52 = vrot.slane %v1236_v51, 1  ;;  %v1248_v53 = vadd.f32 %v1247_v50, %v1246_v49 }
 0x4ba   : > { %v1238_v54 = vadd.f32 %v1237_v52, %v1236_v51  ;;  %v1249_v57 = vrot.slane %v1248_v53, 1 }
 0x4bc   : > { %2209 = vpush %v1238_v54  ;;  %v1250_v58 = vadd.f32 %v1249_v57, %v1248_v53 }
 0x4be   : > { %2211 = vpush %v1250_v58 }
 0x4ed   : > { %s2210_s30 = spop %2209 }
 0x4ee   : > { %s1260_s23 = smul.f32 %s2210_s30, %s2691_s1  ;;  %s3254_s30 = smov 127  }
 0x4ef   : > { %s2212_s5 = spop %2211 }
 0x4f0   : > { %s1270_s29 = smul.f32 %s1260_s23, %s1260_s23  ;;  %v1272_v7 = vstv %s1260_s23 }
 0x4f1   : > { %s1269_s26 = smul.f32 %s2212_s5, %s2691_s1  ;;  %v1273_v8 = vsub.f32 %v1207_v20, %v1272_v7  ;;  %v1274_v9 = vsub.f32 %v1227_v21, %v1272_v7 }
 0x4f3   : > { %s1271_s25 = ssub.f32 %s1269_s26, %s1270_s29  ;;  %s3253_s26 = smov 1  }
 0x4f5   : > { %s1275_s24 = sadd.f32 1e-05, %s1271_s25  ;;  %s3252_s25 = smov 112  }
 0x4f7   : > { %v1276_v59 = vstv %s1275_s24  ;;  %s3251_s24 = smov 111  }
 0x4f8   : > { %2282 = vrsqrt.f32 %v1276_v59  ;;  %vm1283_vm12 = vweird.f32 %v1276_v59 }
 0x4fe   : > { %v2283_v36 = vpop.eup %2282 }
 0x4ff   : > { %v1278_v60 = vmul.f32 %v2283_v36, %v1276_v59  ;;  %vm1284_vm11 = vweird.f32 %v2283_v36 }
 0x500   : > { %vm1285_vm13 = vmor %vm1283_vm12, %vm1284_vm11 }
 0x501   : > { %v1279_v37 = vmul.f32 %v2283_v36, %v1278_v60 }
 0x503   : > { %v1280_v61 = vmul.f32 0.5, %v1279_v37 }
 0x505   : > { %v1281_v62 = vsub.f32 1.5, %v1280_v61 }
 0x507   : > { %v1282_v2 = vmul.f32 %v2283_v36, %v1281_v62 }
 0x509   : > { %v1286_v3 = vsel %vm1285_vm13, %v2283_v36, %v1282_v2 }
 0x50a   : > { %2213 = vpush %v1286_v3 }
 0x53b   : > { %s2214_s1 = spop %2213 }
 0x53c   : > { %v1288_v10 = vstv %s2214_s1 }
 0x53d   : > { %v1289_v11 = vmul.f32 %v1288_v10, %v1273_v8  ;;  %v1290_v12 = vmul.f32 %v1288_v10, %v1274_v9 }
 0x53f   : > { %v1297_v45 = vmul.f32 %v1295_v6, %v1289_v11  ;;  %v1298_v13 = vmul.f32 %v1295_v6, %v1290_v12 }
 0x541   : > { %v1305_v44 = vadd.f32 %v1303_v43, %v1297_v45  ;;  %v1306_v48 = vadd.f32 %v1303_v43, %v1298_v13 }
 0x543   : > { %v2793_v16 = vadd.f32 %v1305_v44, %v2511_v22  ;;  %v2796_v17 = vadd.f32 %v1306_v48, %v2520_v25 }
 0x545   : > { %v2799_v18 = vmul.f32 0.70710677, %v2793_v16  ;;  %v2802_v19 = vmul.f32 0.70710677, %v2796_v17 }
 0x547   : > { %v1317_v20 = vand.u32 2147483647, %v2799_v18  ;;  %v1318_v21 = vand.u32 2147483647, %v2802_v19 }
 0x549   : > { %v1319_v26 = vmul.f32 0.3275911, %v1317_v20  ;;  %v1320_v27 = vmul.f32 0.3275911, %v1318_v21  ;;  %v1371_v37 = vsub.f32 0.0, %v1317_v20  ;;  %v1372_v2 = vsub.f32 0.0, %v1318_v21 }
 0x54b   : > { %v1321_v28 = vadd.f32 1.0, %v1319_v26  ;;  %v1322_v29 = vadd.f32 1.0, %v1320_v27  ;;  %v1373_v8 = vmul.f32 %v1371_v37, %v1317_v20  ;;  %v1374_v10 = vmul.f32 %v1372_v2, %v1318_v21 }
 0x54d   : > { %2284 = vrcp.f32 %v1321_v28  ;;  %v1334_v40 = vand.u32 2147483648, %v1321_v28  ;;  %v1332_v49 = vand.u32 2147483647, %v1321_v28  ;;  %v1349_v50 = vand.u32 2147483648, %v1322_v29 }
 0x54e   : > { %2286 = vrcp.f32 %v1322_v29  ;;  %v1347_v52 = vand.u32 2147483647, %v1322_v29  ;;  %vm1328_vm10 = vweird.f32 %v1321_v28  ;;  %vm1343_vm0 = vweird.f32 %v1322_v29 }
 0x54f   : > { %v1335_v54 = vor.u32 1.1754944e-38, %v1334_v40  ;;  %vm1333_vm11 = vcmp.eq.f32.partialorder %v1332_v49, 8.507059e+37  ;;  %v1350_v59 = vor.u32 1.1754944e-38, %v1349_v50  ;;  %v1375_v13 = vmul.f32 1.442695, %v1373_v8 }
 0x550   : > { %vm1348_vm13 = vcmp.eq.f32.partialorder %v1347_v52, 8.507059e+37  ;;  %v1377_v44 = vmul.f32 1.442695, %v1374_v10 }
 0x551   : > { %2288 = vpow2.f32 %v1375_v13 }
 0x552   : > { %2290 = vpow2.f32 %v1377_v44 }
 0x553   : > { %v2285_v22 = vpop.eup %2284 }
 0x554   : > { %v2287_v31 = vpop.eup %2286  ;;  %v1324_v25 = vmul.f32 %v2285_v22, %v1321_v28  ;;  %vm1329_vm14 = vweird.f32 %v2285_v22 }
 0x555   : > { %v1339_v34 = vmul.f32 %v2287_v31, %v1322_v29  ;;  %vm1344_vm1 = vweird.f32 %v2287_v31  ;;  %vm1330_vm15 = vmor %vm1328_vm10, %vm1329_vm14  ;;  %vm1313_vm14 = vcmp.ge.f32.partialorder %v2799_v18, 0.0  ;;  %vm3255_vm10 = vcmask 588800  }
 0x556   : > { %v1325_v35 = vsub.f32 1.0, %v1324_v25  ;;  %vm1345_vm12 = vmor %vm1343_vm0, %vm1344_vm1  ;;  %vm1314_vm1 = vcmp.ge.f32.partialorder %v2802_v19, 0.0  ;;  %vm3257_vm0 = vcmask 1043456  }
 0x557   : > { %v1340_v41 = vsub.f32 1.0, %v1339_v34  ;;  %v2289_v34 = vpop.eup %2288  ;;  %v1316_v50 = vsel %vm1314_vm1, 1.0, %v2369_v1 }
 0x558   : > { %v1326_v42 = vmul.f32 %v2285_v22, %v1325_v35  ;;  %v2291_v35 = vpop.eup %2290 }
 0x559   : > { %v1341_v51 = vmul.f32 %v2287_v31, %v1340_v41 }
 0x55a   : > { %v1327_v53 = vadd.f32 %v2285_v22, %v1326_v42  ;;  %v1315_v42 = vsel %vm1313_vm14, 1.0, %v2369_v1 }
 0x55b   : > { %v1342_v57 = vadd.f32 %v2287_v31, %v1341_v51 }
 0x55c   : > { %v1331_v58 = vsel %vm1330_vm15, %v2285_v22, %v1327_v53  ;;  %v1309_v53 = vmul.f32 0.5, %v2793_v16  ;;  %vm3256_vm15 = vmmov %vm3255_vm10 }
 0x55d   : > { %v1336_v36 = vsel %vm1333_vm11, %v1335_v54, %v1331_v58  ;;  %v1346_v60 = vsel %vm1345_vm12, %v2287_v31, %v1342_v57  ;;  %v1310_v57 = vmul.f32 0.5, %v2796_v17  ;;  %vm3258_vm11 = vmmov %vm3257_vm0 }
 0x55e   : > { %v1351_v61 = vsel %vm1348_vm13, %v1350_v59, %v1346_v60  ;;  %v1353_v62 = vmul.f32 1.0614054, %v1336_v36  ;;  %vm3259_vm12 = vmmov %vm3257_vm0 }
 0x55f   : > { %v1354_v3 = vmul.f32 1.0614054, %v1351_v61  ;;  %vm3260_vm13 = vmmov %vm3257_vm0 }
 0x560   : > { %v1355_v6 = vadd.f32 -1.4531521, %v1353_v62 }
 0x561   : > { %v1356_v7 = vadd.f32 -1.4531521, %v1354_v3 }
 0x562   : > { %v1357_v9 = vmul.f32 %v1355_v6, %v1336_v36 }
 0x563   : > { %v1358_v11 = vmul.f32 %v1356_v7, %v1351_v61 }
 0x564   : > { %v1359_v12 = vadd.f32 1.4214138, %v1357_v9 }
 0x565   : > { %v1360_v45 = vadd.f32 1.4214138, %v1358_v11 }
 0x566   : > { %v1361_v43 = vmul.f32 %v1359_v12, %v1336_v36 }
 0x567   : > { %v1362_v48 = vmul.f32 %v1360_v45, %v1351_v61 }
 0x568   : > { %v1363_v26 = vadd.f32 -0.28449672, %v1361_v43 }
 0x569   : > { %v1364_v27 = vadd.f32 -0.28449672, %v1362_v48 }
 0x56a   : > { %v1365_v28 = vmul.f32 %v1363_v26, %v1336_v36 }
 0x56b   : > { %v1366_v29 = vmul.f32 %v1364_v27, %v1351_v61 }
 0x56c   : > { %v1367_v22 = vadd.f32 0.2548296, %v1365_v28 }
 0x56d   : > { %v1368_v31 = vadd.f32 0.2548296, %v1366_v29 }
 0x56e   : > { %v1369_v25 = vmul.f32 %v1367_v22, %v1336_v36 }
 0x56f   : > { %v1370_v20 = vmul.f32 %v1368_v31, %v1351_v61 }
 0x570   : > { %v1379_v21 = vmul.f32 %v2289_v34, %v1369_v25 }
 0x571   : > { %v1380_v40 = vmul.f32 %v2291_v35, %v1370_v20 }
 0x572   : > { %v1381_v41 = vsub.f32 1.0, %v1379_v21 }
 0x573   : > { %v1382_v49 = vsub.f32 1.0, %v1380_v40 }
 0x574   : > { %v1383_v51 = vmul.f32 %v1381_v41, %v1315_v42 }
 0x575   : > { %v1384_v52 = vmul.f32 %v1382_v49, %v1316_v50 }
 0x576   : > { %v1385_v54 = vadd.f32 1.0, %v1383_v51 }
 0x577   : > { %v1386_v58 = vadd.f32 1.0, %v1384_v52 }
 0x578   : > { %v1387_v59 = vmul.f32 %v1385_v54, %v1309_v53 }
 0x579   : > { %v1388_v18 = vmul.f32 %v1386_v58, %v1310_v57 }
 0x57a   : > { %1429 = vrot.lane.b32.xlu1 %v1387_v59, %s3244_s2  ;;  %1445 = vrot.lane.b32.xlu0 %v1387_v59, %s3251_s24 }
 0x57b   : > { %1439 = vrot.lane.b32.xlu2 %v1388_v18, %s3252_s25 }
 0x582   : > { %1415 = vrot.lane.b32.xlu1 %v1388_v18, %s3253_s26  ;;  %1447 = vrot.lane.b32.xlu0 %v1388_v18, %s3251_s24 }
 0x583   : > { %1413 = vrot.lane.b32.xlu2 %v1387_v59, %s3253_s26 }
 0x58a   : > { %1397 = vrot.lane.b32.xlu1 %v1387_v59, %s3245_s27  ;;  %1437 = vrot.lane.b32.xlu0 %v1387_v59, %s3252_s25 }
 0x58b   : > { %1407 = vrot.lane.b32.xlu2 %v1388_v18, %s3243_s6 }
 0x592   : > { %1391 = vrot.lane.b32.xlu1 %v1388_v18, %s3246_s28  ;;  %1431 = vrot.lane.b32.xlu0 %v1388_v18, %s3244_s2 }
 0x593   : > { %1389 = vrot.lane.b32.xlu2 %v1387_v59, %s3246_s28 }
 0x59a   : > { %1421 = vrot.lane.b32.xlu0 %v1387_v59, %s3254_s30 }
 0x5a2   : > { %1423 = vrot.lane.b32.xlu0 %v1388_v18, %s3254_s30 }
 0x5aa   : > { %1405 = vrot.lane.b32.xlu0 %v1387_v59, %s3243_s6 }
 0x5b2   : > { %1399 = vrot.lane.b32.xlu0 %v1388_v18, %s3245_s27 }
 0x5d5   : > { %v1440_v61 = vpop.permute.xlu2 %1439 }
 0x5dd   : > { %v1414_v13 = vpop.permute.xlu2 %1413 }
 0x5e5   : > { %v1408_v31 = vpop.permute.xlu2 %1407 }
 0x5ec   : > { %v1446_v16 = vpop.permute.xlu0 %1445  ;;  %v1430_v8 = vpop.permute.xlu1 %1429 }
 0x5ed   : > { %v1390_v49 = vpop.permute.xlu2 %1389 }
 0x5f4   : > { %v1448_v17 = vpop.permute.xlu0 %1447  ;;  %v1416_v45 = vpop.permute.xlu1 %1415 }
 0x5f5   : > { %v1449_v19 = vsel %vm913_vm3, %v1446_v16, %v1448_v17  ;;  %v1450_v36 = vsel %vm913_vm3, %v1448_v17, %v1446_v16  ;;  %v1417_v28 = vsel %vm869_vm7, %v1414_v13, %v1416_v45  ;;  %v1418_v29 = vsel %vm869_vm7, %v1416_v45, %v1414_v13  ;;  %v1453_v16 = vld [vmem:[%s3194_s12] sm:$0xf] }
 0x5f6   : > { %v1451_v60 = vmul.f32 %v2555_v32, %v1449_v19  ;;  %v1452_v37 = vmul.f32 %v2560_v33, %v1450_v36  ;;  %v1419_v25 = vmul.f32 %v1418_v29, %v2621_v63  ;;  %v1420_v34 = vmul.f32 %v1417_v28, %v2624_v0 }
 0x5f8   : > { %1464 = vmatpush.msrb.mxu2 %v1451_v60  ;;  %1484 = vmatpush.msrb.mxu3 %v1452_v37 }
 0x5fc   : > { %v1438_v62 = vpop.permute.xlu0 %1437  ;;  %v1398_v22 = vpop.permute.xlu1 %1397 }
 0x5fd   : > { %v1441_v2 = vsel %vm902_vm2, %v1438_v62, %v1440_v61  ;;  %v1442_v3 = vsel %vm902_vm2, %v1440_v61, %v1438_v62 }
 0x5fe   : > { %v1443_v6 = vmul.f32 %v1441_v2, %v2574_v38  ;;  %v1444_v7 = vmul.f32 %v1442_v3, %v2577_v39 }
 0x600   : > { %1465 = vmatpush.msrb.mxu2 %v1443_v6  ;;  %1485 = vmatpush.msrb.mxu3 %v1444_v7  ;;  %v1562_v7 = vld [vmem:[%s3195_s13] sm:$0xf] }
 0x601   : > { %1565 = vperm.xlu1 %2266, %v1562_v7  }
 0x604   : > { %v1432_v32 = vpop.permute.xlu0 %1431  ;;  %v1392_v42 = vpop.permute.xlu1 %1391 }
 0x605   : > { %v1433_v33 = vsel %vm891_vm4, %v1430_v8, %v1432_v32  ;;  %v1434_v9 = vsel %vm891_vm4, %v1432_v32, %v1430_v8  ;;  %v1393_v51 = vsel %vm836_vm9, %v1390_v49, %v1392_v42  ;;  %v1394_v52 = vsel %vm836_vm9, %v1392_v42, %v1390_v49  ;;  %v1570_v32 = vld [vmem:[%s3196_s14] sm:$0xf] }
 0x606   : > { %v1435_v10 = vmul.f32 %v1433_v33, %v2590_v46  ;;  %v1436_v11 = vmul.f32 %v1434_v9, %v2593_v47  ;;  %v2370_v8 = vmov 1024.0  }
 0x607   : > { %2292 = vrcp.f32 %v2370_v8 }
 0x608   : > { %1466 = vmatpush.msrb.mxu2 %v1435_v10  ;;  %1486 = vmatpush.msrb.mxu3 %v1436_v11 }
 0x609   : > { %1573 = vperm.xlu1 %2266, %v1570_v32  }
 0x60c   : > { %v1422_v12 = vpop.permute.xlu0 %1421 }
 0x60d   : > { %v2293_v33 = vpop.eup %2292 }
 0x60e   : > { %v1524_v9 = vmul.f32 1024.0, %v2293_v33  ;;  %vm1528_vm14 = vweird.f32 %v2293_v33 }
 0x614   : > { %v1424_v43 = vpop.permute.xlu0 %1423 }
 0x615   : > { %v1425_v44 = vsel %vm880_vm5, %v1422_v12, %v1424_v43  ;;  %v1426_v48 = vsel %vm880_vm5, %v1424_v43, %v1422_v12  ;;  %v1525_v12 = vsub.f32 1.0, %v1524_v9 }
 0x616   : > { %v1427_v26 = vmul.f32 %v1425_v44, %v2605_v55  ;;  %v1428_v27 = vmul.f32 %v1426_v48, %v2608_v56 }
 0x618   : > { %1467 = vmatpush.msrb.mxu2 %v1427_v26  ;;  %1487 = vmatpush.msrb.mxu3 %v1428_v27  ;;  %v1526_v26 = vmul.f32 %v2293_v33, %v1525_v12 }
 0x61a   : > { %1468 = vmatpush.msrb.mxu2 %v1387_v59  ;;  %1488 = vmatpush.msrb.mxu3 %v1388_v18  ;;  %v1395_v59 = vmul.f32 %v1394_v52, %v2659_v23  ;;  %v1396_v18 = vmul.f32 %v1393_v51, %v2662_v24 }
 0x61c   : > { %1469 = vmatpush.msrb.mxu2 %v1419_v25  ;;  %1489 = vmatpush.msrb.mxu3 %v1420_v34  ;;  %v1406_v20 = vpop.permute.xlu0 %1405 }
 0x61d   : > { %v1409_v35 = vsel %vm858_vm6, %v1406_v20, %v1408_v31  ;;  %v1410_v21 = vsel %vm858_vm6, %v1408_v31, %v1406_v20  ;;  %v1527_v31 = vadd.f32 %v2293_v33, %v1526_v26 }
 0x61e   : > { %v1411_v40 = vmul.f32 %v1410_v21, %v2627_v4  ;;  %v1412_v41 = vmul.f32 %v1409_v35, %v2630_v5 }
 0x61f   : > { %v1529_v35 = vsel %vm1528_vm14, %v2293_v33, %v1527_v31 }
 0x620   : > { %1470 = vmatpush.msrb.mxu2 %v1411_v40  ;;  %1490 = vmatpush.msrb.mxu3 %v1412_v41 }
 0x624   : > { %v1400_v50 = vpop.permute.xlu0 %1399 }
 0x625   : > { %v1401_v53 = vsel %vm847_vm8, %v1398_v22, %v1400_v50  ;;  %v1402_v54 = vsel %vm847_vm8, %v1400_v50, %v1398_v22 }
 0x626   : > { %v1403_v57 = vmul.f32 %v1402_v54, %v2646_v14  ;;  %v1404_v58 = vmul.f32 %v1401_v53, %v2649_v15 }
 0x628   : > { %1471 = vmatpush.msrb.mxu2 %v1403_v57  ;;  %1491 = vmatpush.msrb.mxu3 %v1404_v58 }
 0x62a   : > { %1472 = vmatpush.msrb.mxu2 %v1395_v59  ;;  %1492 = vmatpush.msrb.mxu3 %v1396_v18 }
 0x62b   : > { %2186 = vmatmul.msk.f32.vlgmr.msrb.gmra.mxu2 %vm3255_vm10, %v1453_v16  ;;  %2187 = vmatmul.msk.f32.vlgmr.msrb.gmra.mxu3 %vm3256_vm15, %v1453_v16 }
 0x673   : > { %v1566_v53 = vpop.permute.xlu1 %1565 }
 0x6ae   : > { %v2881_v17 = vpop.f32.mrf.mxu2  ;;  %v2883_v19 = vpop.f32.mrf.mxu3 }
 0x6af   : > { %v1509_v36 = vmul.f32 %v2881_v17, %v2881_v17  ;;  %v1510_v60 = vmul.f32 %v2883_v19, %v2883_v19  ;;  %v1497_v37 = vsel %vm3257_vm0, %v2881_v17, 0.0  ;;  %v1498_v61 = vsel %vm3258_vm11, %v2883_v19, 0.0 }
 0x6b0   : > { %v1499_v62 = vadd.f32 %v1498_v61, %v1497_v37  ;;  %v1574_v37 = vpop.permute.xlu1 %1573 }
 0x6b1   : > { %v1511_v2 = vsel %vm3259_vm12, %v1509_v36, 0.0  ;;  %v1512_v3 = vsel %vm3260_vm13, %v1510_v60, 0.0 }
 0x6b2   : > { %1500 = vadd.xlane.f32.xlu0 %v1499_v62  ;;  %v1513_v6 = vadd.f32 %v1512_v3, %v1511_v2 }
 0x6b4   : > { %1514 = vadd.xlane.f32.xlu2 %v1513_v6 }
 0x725   : > { %v1501_v10 = vpop.xlane.xlu0 %1500 }
 0x726   : > { %v1502_v11 = vrot.slane %v1501_v10, 4 }
 0x727   : > { %v1515_v45 = vpop.xlane.xlu2 %1514 }
 0x728   : > { %v1503_v13 = vadd.f32 %v1502_v11, %v1501_v10  ;;  %v1516_v43 = vrot.slane %v1515_v45, 4 }
 0x72a   : > { %v1504_v44 = vrot.slane %v1503_v13, 2  ;;  %v1517_v48 = vadd.f32 %v1516_v43, %v1515_v45 }
 0x72c   : > { %v1518_v27 = vrot.slane %v1517_v48, 2  ;;  %v1505_v28 = vadd.f32 %v1504_v44, %v1503_v13 }
 0x72e   : > { %v1506_v29 = vrot.slane %v1505_v28, 1  ;;  %v1519_v22 = vadd.f32 %v1518_v27, %v1517_v48 }
 0x730   : > { %v1507_v25 = vadd.f32 %v1506_v29, %v1505_v28  ;;  %v1520_v34 = vrot.slane %v1519_v22, 1 }
 0x732   : > { %2215 = vpush %v1507_v25  ;;  %v1521_v20 = vadd.f32 %v1520_v34, %v1519_v22 }
 0x734   : > { %2217 = vpush %v1521_v20 }
 0x735   : > { %2219 = vpush %v1529_v35 }
 0x763   : > { %s2216_s29 = spop %2215 }
 0x765   : > { %s2218_s1 = spop %2217 }
 0x766   : > { %s2220_s23 = spop %2219 }
 0x767   : > { %s1531_s5 = smul.f32 %s2220_s23, %s2216_s29 }
 0x768   : > { %s1540_s7 = smul.f32 %s2220_s23, %s2218_s1 }
 0x769   : > { %s1541_s8 = smul.f32 %s1531_s5, %s1531_s5  ;;  %v1543_v54 = vstv %s1531_s5 }
 0x76a   : > { %v1544_v57 = vsub.f32 %v2881_v17, %v1543_v54  ;;  %v1545_v58 = vsub.f32 %v2883_v19, %v1543_v54 }
 0x76b   : > { %s1542_s9 = ssub.f32 %s1540_s7, %s1541_s8 }
 0x76d   : > { %s1546_s10 = sadd.f32 1e-05, %s1542_s9 }
 0x76f   : > { %v1547_v21 = vstv %s1546_s10  ;;  %s3272_s10 = sshll.u32 %s3275_s0, 3 }
 0x770   : > { %2294 = vrsqrt.f32 %v1547_v21  ;;  %vm1554_vm10 = vweird.f32 %v1547_v21 }
 0x776   : > { %v2295_v40 = vpop.eup %2294 }
 0x777   : > { %v1549_v41 = vmul.f32 %v2295_v40, %v1547_v21  ;;  %vm1555_vm1 = vweird.f32 %v2295_v40 }
 0x778   : > { %vm1556_vm15 = vmor %vm1554_vm10, %vm1555_vm1 }
 0x779   : > { %v1550_v42 = vmul.f32 %v2295_v40, %v1549_v41 }
 0x77b   : > { %v1551_v49 = vmul.f32 0.5, %v1550_v42 }
 0x77d   : > { %v1552_v50 = vsub.f32 1.5, %v1551_v49 }
 0x77f   : > { %v1553_v51 = vmul.f32 %v2295_v40, %v1552_v50 }
 0x781   : > { %v1557_v52 = vsel %vm1556_vm15, %v2295_v40, %v1553_v51 }
 0x782   : > { %2221 = vpush %v1557_v52 }
 0x7b3   : > { %s2222_s7 = spop %2221 }
 0x7b4   : > { %v1559_v59 = vstv %s2222_s7 }
 0x7b5   : > { %v1560_v18 = vmul.f32 %v1559_v59, %v1544_v57  ;;  %v1561_v16 = vmul.f32 %v1559_v59, %v1545_v58 }
 0x7b7   : > { %v1568_v36 = vmul.f32 %v1566_v53, %v1560_v18  ;;  %v1569_v60 = vmul.f32 %v1566_v53, %v1561_v16 }
 0x7b9   : > { %v2903_v61 = vadd.f32 %v1574_v37, %v1568_v36  ;;  %v2905_v62 = vadd.f32 %v1574_v37, %v1569_v60 }
 0x7bb   : > { %v2908_v2 = vmul.f32 0.70710677, %v2903_v61  ;;  %v2911_v3 = vmul.f32 0.70710677, %v2905_v62 }
 0x7bd   : > { %v1586_v17 = vand.u32 2147483647, %v2908_v2  ;;  %v1587_v19 = vand.u32 2147483647, %v2911_v3 }
 0x7bf   : > { %v1588_v6 = vmul.f32 0.3275911, %v1586_v17  ;;  %v1589_v7 = vmul.f32 0.3275911, %v1587_v19  ;;  %v1640_v35 = vsub.f32 0.0, %v1586_v17  ;;  %v1641_v41 = vsub.f32 0.0, %v1587_v19 }
 0x7c1   : > { %v1590_v8 = vadd.f32 1.0, %v1588_v6  ;;  %v1591_v32 = vadd.f32 1.0, %v1589_v7  ;;  %v1642_v51 = vmul.f32 %v1640_v35, %v1586_v17  ;;  %v1643_v53 = vmul.f32 %v1641_v41, %v1587_v19 }
 0x7c3   : > { %2296 = vrcp.f32 %v1590_v8  ;;  %v1603_v45 = vand.u32 2147483648, %v1590_v8  ;;  %v1601_v44 = vand.u32 2147483647, %v1590_v8  ;;  %v1618_v48 = vand.u32 2147483648, %v1591_v32 }
 0x7c4   : > { %2298 = vrcp.f32 %v1591_v32  ;;  %v1616_v27 = vand.u32 2147483647, %v1591_v32  ;;  %vm1597_vm12 = vweird.f32 %v1590_v8  ;;  %vm1612_vm14 = vweird.f32 %v1591_v32 }
 0x7c5   : > { %v1604_v29 = vor.u32 1.1754944e-38, %v1603_v45  ;;  %vm1602_vm1 = vcmp.eq.f32.partialorder %v1601_v44, 8.507059e+37  ;;  %v1619_v25 = vor.u32 1.1754944e-38, %v1618_v48  ;;  %v1644_v59 = vmul.f32 1.442695, %v1642_v51 }
 0x7c6   : > { %vm1617_vm15 = vcmp.eq.f32.partialorder %v1616_v27, 8.507059e+37  ;;  %v1646_v16 = vmul.f32 1.442695, %v1643_v53 }
 0x7c7   : > { %2300 = vpow2.f32 %v1644_v59 }
 0x7c8   : > { %2302 = vpow2.f32 %v1646_v16 }
 0x7c9   : > { %v2297_v33 = vpop.eup %2296 }
 0x7ca   : > { %v2299_v9 = vpop.eup %2298  ;;  %v1593_v10 = vmul.f32 %v2297_v33, %v1590_v8  ;;  %vm1598_vm0 = vweird.f32 %v2297_v33 }
 0x7cb   : > { %v1608_v11 = vmul.f32 %v2299_v9, %v1591_v32  ;;  %vm1613_vm11 = vweird.f32 %v2299_v9  ;;  %vm1599_vm13 = vmor %vm1597_vm12, %vm1598_vm0  ;;  %vm1582_vm0 = vcmp.ge.f32.partialorder %v2908_v2, 0.0  ;;  %vm3261_vm12 = vcmask 1043456  }
 0x7cc   : > { %v1594_v12 = vsub.f32 1.0, %v1593_v10  ;;  %vm1614_vm10 = vmor %vm1612_vm14, %vm1613_vm11  ;;  %vm1583_vm11 = vcmp.ge.f32.partialorder %v2911_v3, 0.0  ;;  %v1584_v45 = vsel %vm1582_vm0, 1.0, %v2369_v1  ;;  %vm1756_vm14 = vcmask 293888  }
 0x7cd   : > { %v1609_v13 = vsub.f32 1.0, %v1608_v11 }
 0x7ce   : > { %v1595_v43 = vmul.f32 %v2297_v33, %v1594_v12 }
 0x7cf   : > { %v1610_v26 = vmul.f32 %v2299_v9, %v1609_v13 }
 0x7d0   : > { %v1596_v28 = vadd.f32 %v2297_v33, %v1595_v43  ;;  %v1585_v43 = vsel %vm1583_vm11, 1.0, %v2369_v1  ;;  %vm2026_vm11 = vcmask 261120  }
 0x7d1   : > { %v1611_v22 = vadd.f32 %v2299_v9, %v1610_v26  ;;  %v1578_v26 = vmul.f32 0.5, %v2903_v61 }
 0x7d2   : > { %v1600_v31 = vsel %vm1599_vm13, %v2297_v33, %v1596_v28  ;;  %v1579_v28 = vmul.f32 0.5, %v2905_v62  ;;  %vm3262_vm13 = vmmov %vm3261_vm12 }
 0x7d3   : > { %v1605_v34 = vsel %vm1602_vm1, %v1604_v29, %v1600_v31  ;;  %v1615_v20 = vsel %vm1614_vm10, %v2299_v9, %v1611_v22  ;;  %v2301_v9 = vpop.eup %2300 }
 0x7d4   : > { %v1620_v21 = vsel %vm1617_vm15, %v1619_v25, %v1615_v20  ;;  %v1622_v40 = vmul.f32 1.0614054, %v1605_v34  ;;  %v2303_v10 = vpop.eup %2302  ;;  %v2312_v20 = vld [vmem:[%s3239_s4 + $0x10] ss:$0 sm:$0xff] }
 0x7d5   : > { %v1623_v42 = vmul.f32 1.0614054, %v1620_v21 }
 0x7d6   : > { %v1624_v49 = vadd.f32 -1.4531521, %v1622_v40 }
 0x7d7   : > { %v1625_v50 = vadd.f32 -1.4531521, %v1623_v42 }
 0x7d8   : > { %v1626_v52 = vmul.f32 %v1624_v49, %v1605_v34 }
 0x7d9   : > { %v1627_v54 = vmul.f32 %v1625_v50, %v1620_v21 }
 0x7da   : > { %v1628_v57 = vadd.f32 1.4214138, %v1626_v52 }
 0x7db   : > { %v1629_v58 = vadd.f32 1.4214138, %v1627_v54 }
 0x7dc   : > { %v1630_v18 = vmul.f32 %v1628_v57, %v1605_v34 }
 0x7dd   : > { %v1631_v36 = vmul.f32 %v1629_v58, %v1620_v21 }
 0x7de   : > { %v1632_v60 = vadd.f32 -0.28449672, %v1630_v18 }
 0x7df   : > { %v1633_v37 = vadd.f32 -0.28449672, %v1631_v36 }
 0x7e0   : > { %v1634_v6 = vmul.f32 %v1632_v60, %v1605_v34 }
 0x7e1   : > { %v1635_v7 = vmul.f32 %v1633_v37, %v1620_v21 }
 0x7e2   : > { %v1636_v8 = vadd.f32 0.2548296, %v1634_v6 }
 0x7e3   : > { %v1637_v32 = vadd.f32 0.2548296, %v1635_v7 }
 0x7e4   : > { %v1638_v33 = vmul.f32 %v1636_v8, %v1605_v34 }
 0x7e5   : > { %v1639_v17 = vmul.f32 %v1637_v32, %v1620_v21  ;;  %v2313_v21 = vld [vmem:[%s3239_s4 + $0x18] ss:$0 sm:$0xff] }
 0x7e6   : > { %v1648_v19 = vmul.f32 %v2301_v9, %v1638_v33 }
 0x7e7   : > { %v1649_v11 = vmul.f32 %v2303_v10, %v1639_v17 }
 0x7e8   : > { %v1650_v12 = vsub.f32 1.0, %v1648_v19 }
 0x7e9   : > { %v1651_v13 = vsub.f32 1.0, %v1649_v11 }
 0x7ea   : > { %v1652_v44 = vmul.f32 %v1650_v12, %v1584_v45 }
 0x7eb   : > { %v1653_v48 = vmul.f32 %v1651_v13, %v1585_v43 }
 0x7ec   : > { %v1654_v27 = vadd.f32 1.0, %v1652_v44  ;;  %v1950_v44 = vld [vmem:[%s3200_s18 + $0xd0] sm:$0xff] }
 0x7ed   : > { %v1655_v29 = vadd.f32 1.0, %v1653_v48  ;;  %v1951_v48 = vld [vmem:[%s3200_s18 + $0xd8] sm:$0xff]  ;;  %1960 = vmatpush.msra.mxu2 %v1950_v44  ;;  %v1926_v44 = vld [vmem:[%s3200_s18 + $0x10] sm:$0xff] }
 0x7ee   : > { %v1656_v22 = vmul.f32 %v1654_v27, %v1578_v26  ;;  %1980 = vmatpush.msra.mxu3 %v1951_v48  ;;  %v1927_v48 = vld [vmem:[%s3200_s18 + $0x18] sm:$0xff] }
 0x7ef   : > { %v1657_v2 = vmul.f32 %v1655_v29, %v1579_v28 }
 0x7f0   : > { %1690 = vrot.lane.b32.xlu2 %v1656_v22, %s3254_s30  ;;  %1706 = vrot.lane.b32.xlu1 %v1656_v22, %s3252_s25 }
 0x7f1   : > { %1716 = vrot.lane.b32.xlu0 %v1657_v2, %s3251_s24 }
 0x7f8   : > { %1684 = vrot.lane.b32.xlu2 %v1657_v2, %s3253_s26  ;;  %1708 = vrot.lane.b32.xlu1 %v1657_v2, %s3252_s25 }
 0x7f9   : > { %1700 = vrot.lane.b32.xlu0 %v1657_v2, %s3244_s2 }
 0x800   : > { %1674 = vrot.lane.b32.xlu2 %v1656_v22, %s3243_s6  ;;  %1714 = vrot.lane.b32.xlu1 %v1656_v22, %s3251_s24 }
 0x801   : > { %1666 = vrot.lane.b32.xlu0 %v1656_v22, %s3245_s27 }
 0x808   : > { %1660 = vrot.lane.b32.xlu2 %v1657_v2, %s3246_s28  ;;  %1692 = vrot.lane.b32.xlu1 %v1657_v2, %s3254_s30 }
 0x809   : > { %1676 = vrot.lane.b32.xlu0 %v1657_v2, %s3243_s6 }
 0x810   : > { %1698 = vrot.lane.b32.xlu1 %v1656_v22, %s3244_s2 }
 0x818   : > { %1682 = vrot.lane.b32.xlu1 %v1656_v22, %s3253_s26 }
 0x820   : > { %1668 = vrot.lane.b32.xlu1 %v1657_v2, %s3245_s27  ;;  %s3273_s27 = sld [smem:[#allocation8_spill]] }
 0x828   : > { %1658 = vrot.lane.b32.xlu1 %v1656_v22, %s3246_s28  ;;  %s3263_s28 = sld [smem:[#allocation7_spill]] }
 0x82e   : > { %s739_s24 = scalar_lea.vmem %s3263_s28, %s3275_s0  ;;  %s743_s28 = scalar_lea.vmem %s3273_s27, %s3272_s10 }
 0x82f   : > { %v2975_v17 = vld [vmem:[%s739_s24] sm:$0x1] }
 0x84a   : > { %v1691_v41 = vpop.permute.xlu2 %1690 }
 0x852   : > { %v1685_v54 = vpop.permute.xlu2 %1684 }
 0x862   : > { %v1707_v1 = vpop.permute.xlu1 %1706 }
 0x863   : > { %v1717_v61 = vpop.permute.xlu0 %1716 }
 0x86a   : > { %v1709_v62 = vpop.permute.xlu1 %1708 }
 0x86b   : > { %v1701_v31 = vpop.permute.xlu0 %1700  ;;  %v1710_v49 = vsel %vm902_vm2, %v1707_v1, %v1709_v62  ;;  %v1711_v50 = vsel %vm902_vm2, %v1709_v62, %v1707_v1  ;;  %vm3264_vm2 = vmmov %vm3261_vm12 }
 0x86c   : > { %v1712_v57 = vmul.f32 %v1710_v49, %v2574_v38  ;;  %v1713_v58 = vmul.f32 %v1711_v50, %v2577_v39  ;;  %vm3270_vm10 = vmmov %vm3264_vm2 }
 0x86d   : > { %vm3271_vm15 = vmmov %vm3264_vm2 }
 0x86e   : > { %v1742_v36 = vrot.slane %v1712_v57, 4  ;;  %v1743_v60 = vrot.slane %v1713_v58, 4  ;;  %v1755_v57 = vld [vmem:[%s3197_s15 + $0x8] sm:$0x1] }
 0x872   : > { %v1715_v3 = vpop.permute.xlu1 %1714 }
 0x873   : > { %v1718_v25 = vsel %vm913_vm3, %v1715_v3, %v1717_v61  ;;  %v1719_v34 = vsel %vm913_vm3, %v1717_v61, %v1715_v3  ;;  %v1667_v51 = vpop.permute.xlu0 %1666  ;;  %vm3265_vm3 = vmmov %vm3264_vm2 }
 0x874   : > { %v1720_v35 = vmul.f32 %v2312_v20, %v1718_v25  ;;  %v1721_v40 = vmul.f32 %v2313_v21, %v1719_v34 }
 0x876   : > { %2188 = vmatpush.msk.msra.mxu0 %vm3261_vm12, %v1720_v35  ;;  %2191 = vmatpush.msk.msra.mxu1 %vm3262_vm13, %v1721_v40  ;;  %vm1954_vm12 = vcmask 916480   ;;  %vm1816_vm13 = vcmask 1040384  }
 0x87a   : > { %v1693_v42 = vpop.permute.xlu1 %1692 }
 0x87b   : > { %v1694_v52 = vsel %vm880_vm5, %v1691_v41, %v1693_v42  ;;  %v1695_v53 = vsel %vm880_vm5, %v1693_v42, %v1691_v41  ;;  %vm3266_vm5 = vmmov %vm3264_vm2 }
 0x87c   : > { %v1696_v59 = vmul.f32 %v1694_v52, %v2605_v55  ;;  %v1697_v18 = vmul.f32 %v1695_v53, %v2608_v56  ;;  %v1677_v56 = vpop.permute.xlu0 %1676 }
 0x87e   : > { %v1736_v7 = vrot.slane %v1696_v59, 4  ;;  %v1737_v8 = vrot.slane %v1697_v18, 4  ;;  %v2020_v59 = vld [vmem:[%s3202_s20 + $0x8] sm:$0xff] }
 0x880   : > { %v1750_v33 = vsel %vm3266_vm5, %v1656_v22, %v1736_v7  ;;  %v1947_v7 = vld [vmem:[%s3200_s18 + $0xb8] sm:$0xff] }
 0x882   : > { %v1699_v16 = vpop.permute.xlu1 %1698 }
 0x883   : > { %v1702_v37 = vsel %vm891_vm4, %v1699_v16, %v1701_v31  ;;  %v1703_v6 = vsel %vm891_vm4, %v1701_v31, %v1699_v16  ;;  %vm3267_vm4 = vmmov %vm3264_vm2 }
 0x884   : > { %v1704_v32 = vmul.f32 %v1702_v37, %v2590_v46  ;;  %v1705_v38 = vmul.f32 %v1703_v6, %v2593_v47  ;;  %v1751_v9 = vsel %vm3267_vm4, %v1657_v2, %v1737_v8  ;;  %v1675_v46 = vpop.permute.xlu2 %1674  ;;  %v2196_v47 = vmul.f32 -1.442695, %v2975_v17  ;;  %v1949_v37 = vld [vmem:[%s3200_s18 + $0xc8] sm:$0xff]  ;;  %v1946_v6 = vld [vmem:[%s3200_s18 + $0xb0] sm:$0xff]  ;;  %v1944_v8 = vld [vmem:[%s3200_s18 + $0xa0] sm:$0xff] }
 0x885   : > { %v1678_v10 = vsel %vm858_vm6, %v1675_v46, %v1677_v56  ;;  %v1679_v11 = vsel %vm858_vm6, %v1677_v56, %v1675_v46  ;;  %vm3268_vm6 = vmmov %vm3264_vm2  ;;  %1981 = vmatpush.msra.mxu3 %v1949_v37  ;;  %v1941_v56 = vld [vmem:[%s3200_s18 + $0x88] sm:$0xff] }
 0x886   : > { %v1752_v39 = vsel %vm3264_vm2, %v1704_v32, %v1742_v36  ;;  %v1753_v55 = vsel %vm3265_vm3, %v1705_v38, %v1743_v60  ;;  %2304 = vpow2.f32 %v2196_v47  ;;  %v1680_v26 = vmul.f32 %v1679_v11, %v2627_v4  ;;  %v1948_v60 = vld [vmem:[%s3200_s18 + $0xc0] sm:$0xff]  ;;  %v1945_v32 = vld [vmem:[%s3200_s18 + $0xa8] sm:$0xff]  ;;  %v1942_v38 = vld [vmem:[%s3200_s18 + $0x90] sm:$0xff] }
 0x887   : > { %1781 = vmatpush.msra.mxu0 %v1752_v39  ;;  %1804 = vmatpush.msra.mxu1 %v1753_v55  ;;  %v1681_v27 = vmul.f32 %v1678_v10, %v2630_v5  ;;  %v1943_v39 = vld [vmem:[%s3200_s18 + $0x98] sm:$0xff]  ;;  %v1940_v55 = vld [vmem:[%s3200_s18 + $0x80] sm:$0xff]  ;;  %v1937_v46 = vld [vmem:[%s3200_s18 + $0x68] sm:$0xff] }
 0x888   : > { %1961 = vmatpush.msra.mxu2 %v1948_v60  ;;  %1982 = vmatpush.msra.mxu3 %v1947_v7  ;;  %v1934_v47 = vld [vmem:[%s3200_s18 + $0x50] sm:$0xff]  ;;  %v1935_v10 = vld [vmem:[%s3200_s18 + $0x58] sm:$0xff]  ;;  %v1933_v11 = vld [vmem:[%s3200_s18 + $0x48] sm:$0xff] }
 0x889   : > { %1782 = vmatpush.msra.mxu0 %v1750_v33  ;;  %1805 = vmatpush.msra.mxu1 %v1751_v9  ;;  %v1938_v33 = vld [vmem:[%s3200_s18 + $0x70] sm:$0xff]  ;;  %v1939_v9 = vld [vmem:[%s3200_s18 + $0x78] sm:$0xff]  ;;  %v2033_v7 = vld [vmem:[%s3203_s21] sm:$0xff] }
 0x88a   : > { %v1683_v19 = vpop.permute.xlu1 %1682  ;;  %1962 = vmatpush.msra.mxu2 %v1946_v6  ;;  %1983 = vmatpush.msra.mxu3 %v1945_v32 }
 0x88b   : > { %v1686_v12 = vsel %vm869_vm7, %v1683_v19, %v1685_v54  ;;  %v1687_v45 = vsel %vm869_vm7, %v1685_v54, %v1683_v19  ;;  %vm3269_vm7 = vmmov %vm3264_vm2  ;;  %v1932_v19 = vld [vmem:[%s3200_s18 + $0x40] sm:$0xff] }
 0x88c   : > { %v1688_v13 = vmul.f32 %v1687_v45, %v2621_v63  ;;  %v1689_v43 = vmul.f32 %v1686_v12, %v2624_v0  ;;  %v2305_v22 = vpop.eup %2304  ;;  %v1661_v31 = vpop.permute.xlu2 %1660  ;;  %1963 = vmatpush.msra.mxu2 %v1944_v8  ;;  %1984 = vmatpush.msra.mxu3 %v1943_v39  ;;  %v1930_v12 = vld [vmem:[%s3200_s18 + $0x30] sm:$0xff]  ;;  %v1931_v45 = vld [vmem:[%s3200_s18 + $0x38] sm:$0xff] }
 0x88d   : > { %v2002_v1 = vadd.f32 1.0, %v2305_v22 }
 0x88e   : > { %v1730_v28 = vrot.slane %v1688_v13, 4  ;;  %v1731_v29 = vrot.slane %v1689_v43, 4  ;;  %1964 = vmatpush.msra.mxu2 %v1942_v38  ;;  %1985 = vmatpush.msra.mxu3 %v1941_v56  ;;  %v1928_v13 = vld [vmem:[%s3200_s18 + $0x20] sm:$0xff]  ;;  %v1929_v43 = vld [vmem:[%s3200_s18 + $0x28] sm:$0xff] }
 0x88f   : > { %2306 = vrcp.f32 %v2002_v1  ;;  %v2014_v21 = vand.u32 2147483648, %v2002_v1  ;;  %v2012_v50 = vand.u32 2147483647, %v2002_v1 }
 0x890   : > { %v1748_v63 = vsel %vm3268_vm6, %v1680_v26, %v1730_v28  ;;  %v1749_v0 = vsel %vm3269_vm7, %v1681_v27, %v1731_v29  ;;  %1965 = vmatpush.msra.mxu2 %v1940_v55  ;;  %1986 = vmatpush.msra.mxu3 %v1939_v9  ;;  %v1924_v26 = vld [vmem:[%s3200_s18] sm:$0xff]  ;;  %v1925_v27 = vld [vmem:[%s3200_s18 + $0x8] sm:$0xff] }
 0x891   : > { %1783 = vmatpush.msra.mxu0 %v1748_v63  ;;  %1806 = vmatpush.msra.mxu1 %v1749_v0  ;;  %vm2013_vm0 = vcmp.eq.f32.partialorder %v2012_v50, 8.507059e+37  ;;  %v1923_v28 = vld [vmem:[%s743_s28] sm:$0x7f]  ;;  %s2200_s28 = sshll.u32 %s3275_s0, 5 }
 0x892   : > { %v1669_v2 = vpop.permute.xlu1 %1668  ;;  %1966 = vmatpush.msra.mxu2 %v1938_v33  ;;  %1987 = vmatpush.msra.mxu3 %v1937_v46 }
 0x893   : > { %v1670_v61 = vsel %vm847_vm8, %v1667_v51, %v1669_v2  ;;  %v1671_v4 = vsel %vm847_vm8, %v1669_v2, %v1667_v51  ;;  %vm2008_vm8 = vweird.f32 %v2002_v1 }
 0x894   : > { %v1672_v5 = vmul.f32 %v1671_v4, %v2646_v14  ;;  %v1673_v62 = vmul.f32 %v1670_v61, %v2649_v15  ;;  %v1754_v15 = vld [vmem:[%s3197_s15] sm:$0xff]  ;;  %1988 = vmatpush.msra.mxu3 %v1935_v10 }
 0x895   : > { %v2307_v3 = vpop.eup %2306 }
 0x896   : > { %v2004_v35 = vmul.f32 %v2307_v3, %v2002_v1  ;;  %v1724_v40 = vrot.slane %v1672_v5, 4  ;;  %v1725_v41 = vrot.slane %v1673_v62, 4  ;;  %vm2009_vm1 = vweird.f32 %v2307_v3  ;;  %1989 = vmatpush.msra.mxu3 %v1933_v11 }
 0x898   : > { %v2005_v49 = vsub.f32 1.0, %v2004_v35  ;;  %1990 = vmatpush.msra.mxu3 %v1931_v45 }
 0x89a   : > { %v1659_v25 = vpop.permute.xlu1 %1658  ;;  %v2006_v52 = vmul.f32 %v2307_v3, %v2005_v49  ;;  %1991 = vmatpush.msra.mxu3 %v1929_v43 }
 0x89b   : > { %v1662_v34 = vsel %vm836_vm9, %v1659_v25, %v1661_v31  ;;  %v1663_v20 = vsel %vm836_vm9, %v1661_v31, %v1659_v25  ;;  %vm2010_vm9 = vmor %vm2008_vm8, %vm2009_vm1 }
 0x89c   : > { %v1664_v42 = vmul.f32 %v1663_v20, %v2659_v23  ;;  %v1665_v14 = vmul.f32 %v1662_v34, %v2662_v24  ;;  %v2015_v23 = vor.u32 1.1754944e-38, %v2014_v21  ;;  %v2007_v24 = vadd.f32 %v2307_v3, %v2006_v52  ;;  %1992 = vmatpush.msra.mxu3 %v1927_v48  ;;  %v1907_v52 = vld [vmem:[%s3199_s17] sm:$0xff] }
 0x89e   : > { %v1746_v51 = vsel %vm3270_vm10, %v1664_v42, %v1724_v40  ;;  %v1747_v30 = vsel %vm3271_vm15, %v1665_v14, %v1725_v41  ;;  %v2011_v53 = vsel %vm2010_vm9, %v2307_v3, %v2007_v24  ;;  %1993 = vmatpush.msra.mxu3 %v1925_v27  ;;  %v2019_v40 = vld [vmem:[%s3202_s20] sm:$0xff] }
 0x89f   : > { %1784 = vmatpush.msra.mxu0 %v1746_v51  ;;  %1807 = vmatpush.msra.mxu1 %v1747_v30  ;;  %v2016_v54 = vsel %vm2013_vm0, %v2015_v23, %v2011_v53  ;;  %v1891_v51 = vld [vmem:[%s3198_s16] sm:$0xff]  ;;  %v1908_v30 = vld [vmem:[%s3199_s17 + $0x8] sm:$0x1]  ;;  %v2371_v23 = vmov 2304.0  }
 0x8a0   : > { %2189 = vmatmul.msk.f32.vlgmr.msra.gmra.mxu0 %vm1756_vm14, %v1754_v15  ;;  %2192 = vmatmul.msk.f32.vlgmr.msra.gmra.mxu1 %vm1756_vm14, %v1754_v15  ;;  %v3021_v58 = vmul.f32 %v2016_v54, %v2975_v17  ;;  %v1936_v17 = vld [vmem:[%s3200_s18 + $0x60] sm:$0xff]  ;;  %v2034_v15 = vld [vmem:[%s3203_s21 + $0x8] sm:$0xff]  ;;  %2308 = vrcp.f32 %v2371_v23 }
 0x8a1   : > { %1967 = vmatpush.msra.mxu2 %v1936_v17  ;;  %2195 = vmatmul.msk.f32.vlgmr.msra.gmra.mxu3 %vm1954_vm12, %v1923_v28  ;;  %v1952_v27 = vld [vmem:[%s3201_s19] sm:$0x7f] }
 0x8a2   : > { %v2022_v18 = vperm.slane %v3021_v58, 0 }
 0x8a3   : > { %1968 = vmatpush.msra.mxu2 %v1934_v47 }
 0x8a4   : > { %v2025_v16 = vmul.f32 %v2022_v18, %v2020_v59  ;;  %v2024_v42 = vmul.f32 %v2022_v18, %v2019_v40 }
 0x8a5   : > { %1969 = vmatpush.msra.mxu2 %v1932_v19 }
 0x8a6   : > { %v2030_v36 = vsel %vm2026_vm11, %v2025_v16, 0.0  ;;  %v2027_v14 = vsel %vm2026_vm11, %v2024_v42, 0.0  ;;  %v2309_v24 = vpop.eup %2308 }
 0x8a7   : > { %2031 = vadd.xlane.f32.xlu2 %v2030_v36  ;;  %1970 = vmatpush.msra.mxu2 %v1930_v12  ;;  %v1849_v53 = vmul.f32 2304.0, %v2309_v24  ;;  %v1892_v36 = vld [vmem:[%s3198_s16 + $0x8] sm:$0x1]  ;;  %vm1853_vm2 = vweird.f32 %v2309_v24 }
 0x8a8   : > { %2190 = vmatmul.msk.f32.gmra.mxu0 %vm1756_vm14, %v1755_v57  ;;  %2193 = vmatmul.msk.f32.gmra.mxu1 %vm1756_vm14, %v1755_v57 }
 0x8a9   : > { %1971 = vmatpush.msra.mxu2 %v1928_v13  ;;  %v1850_v58 = vsub.f32 1.0, %v1849_v53 }
 0x8ab   : > { %1972 = vmatpush.msra.mxu2 %v1926_v44  ;;  %v1851_v6 = vmul.f32 %v2309_v24, %v1850_v58 }
 0x8ad   : > { %1973 = vmatpush.msra.mxu2 %v1924_v26  ;;  %v1852_v56 = vadd.f32 %v2309_v24, %v1851_v6 }
 0x8ae   : > { %2194 = vmatmul.msk.f32.vlgmr.msra.gmra.mxu2 %vm1954_vm12, %v1923_v28 }
 0x8af   : > { %v1854_v47 = vsel %vm1853_vm2, %v2309_v24, %v1852_v56 }
 0x8bf   : > { %1900 = vperm.xlu2 %2267, %v1892_v36  }
 0x91a   : > { %v2032_v49 = vpop.xlane.xlu2 %2031 }
 0x91b   : > { %v2036_v50 = vadd.f32 %v2034_v15, %v2032_v49 }
 0x91d   : > { %v3115_v29 = vpop.f32.mrf.mxu0  ;;  %v3117_v63 = vpop.f32.mrf.mxu1 }
 0x91e   : > { %v1830_v0 = vmul.f32 %v3115_v29, %v3115_v29  ;;  %v1831_v22 = vmul.f32 %v3117_v63, %v3117_v63  ;;  %v1815_v2 = vadd.f32 %v3117_v63, %v3115_v29 }
 0x920   : > { %v1834_v25 = vadd.f32 %v1831_v22, %v1830_v0  ;;  %v1953_v0 = vld [vmem:[%s3201_s19 + $0x8] sm:$0x7f] }
 0x924   : > { %v1995_v22 = vpop.f32.mrf.mxu3 }
 0x925   : > { %v3125_v1 = vpop.f32.mrf.mxu0  ;;  %v3127_v61 = vpop.f32.mrf.mxu1 }
 0x926   : > { %v1817_v4 = vsel %vm1816_vm13, %v3125_v1, 0.0  ;;  %v1832_v5 = vmul.f32 %v3125_v1, %v3125_v1  ;;  %v1819_v62 = vsel %vm1816_vm13, %v3127_v61, 0.0  ;;  %v1833_v3 = vmul.f32 %v3127_v61, %v3127_v61 }
 0x927   : > { %v1818_v31 = vadd.f32 %v1817_v4, %v1815_v2  ;;  %v1901_v4 = vpop.permute.xlu2 %1900 }
 0x928   : > { %v1835_v34 = vsel %vm1816_vm13, %v1832_v5, 0.0  ;;  %v1837_v20 = vsel %vm1816_vm13, %v1833_v3, 0.0 }
 0x929   : > { %v1820_v35 = vadd.f32 %v1819_v62, %v1818_v31  ;;  %v1836_v21 = vadd.f32 %v1835_v34, %v1834_v25  ;;  %v1996_v62 = vadd.f32 %v1995_v22, %v1953_v0 }
 0x92b   : > { %1821 = vadd.xlane.f32.xlu0 %v1820_v35  ;;  %v1838_v41 = vadd.f32 %v1837_v20, %v1836_v21 }
 0x92d   : > { %1839 = vadd.xlane.f32.xlu1 %v1838_v41 }
 0x931   : > { %v1975_v28 = vpop.f32.mrf.mxu2 }
 0x932   : > { %v1976_v5 = vadd.f32 %v1975_v28, %v1952_v27 }
 0x933   : > { %2028 = vadd.xlane.f32.xlu0 %v2027_v14 }
 0x946   : > { %1895 = vperm.xlu1 %2266, %v1891_v51  }
 0x947   : > { %2044 = vperm.xlu0 %2265, %v2036_v50  }
 0x94e   : > { %1916 = vperm.xlu1 %2266, %v1908_v30  }
 0x94f   : > { %1911 = vperm.xlu0 %2265, %v1907_v52  }
 0x99e   : > { %v1822_v54 = vpop.xlane.xlu0 %1821 }
 0x99f   : > { %v1823_v57 = vrot.slane %v1822_v54, 4 }
 0x9a0   : > { %v1840_v59 = vpop.xlane.xlu1 %1839 }
 0x9a1   : > { %v1824_v18 = vadd.f32 %v1823_v57, %v1822_v54  ;;  %v1841_v16 = vrot.slane %v1840_v59, 4 }
 0x9a3   : > { %v1825_v60 = vrot.slane %v1824_v18, 2  ;;  %v1842_v37 = vadd.f32 %v1841_v16, %v1840_v59 }
 0x9a5   : > { %v1843_v8 = vrot.slane %v1842_v37, 2  ;;  %v1826_v32 = vadd.f32 %v1825_v60, %v1824_v18 }
 0x9a6   : > { %v2029_v38 = vpop.xlane.xlu0 %2028 }
 0x9a7   : > { %v1827_v39 = vrot.slane %v1826_v32, 1  ;;  %v1844_v55 = vadd.f32 %v1843_v8, %v1842_v37  ;;  %v2035_v33 = vadd.f32 %v2033_v7, %v2029_v38 }
 0x9a9   : > { %v1828_v9 = vadd.f32 %v1827_v39, %v1826_v32  ;;  %v1845_v17 = vrot.slane %v1844_v55, 1  ;;  %2039 = vperm.xlu2 %2267, %v2035_v33  }
 0x9ab   : > { %2223 = vpush %v1828_v9  ;;  %v1846_v46 = vadd.f32 %v1845_v17, %v1844_v55 }
 0x9ad   : > { %2225 = vpush %v1846_v46 }
 0x9ae   : > { %2227 = vpush %v1854_v47 }
 0x9b8   : > { %v1896_v48 = vpop.permute.xlu1 %1895 }
 0x9b9   : > { %v2045_v26 = vpop.permute.xlu0 %2044 }
 0x9ba   : > { %v2051_v3 = vrot.slane %v2045_v26, 1 }
 0x9bc   : > { %v2053_v14 = vadd.f32 %v2051_v3, %v1976_v5  ;;  %v2054_v15 = vadd.f32 %v2051_v3, %v1996_v62 }
 0x9be   : > { %v2058_v53 = vrot.slane %v2054_v15, 7 }
 0x9c1   : > { %v1912_v52 = vpop.permute.xlu0 %1911 }
 0x9dc   : > { %s2224_s26 = spop %2223 }
 0x9de   : > { %s2226_s30 = spop %2225 }
 0x9df   : > { %s2228_s29 = spop %2227 }
 0x9e0   : > { %s1856_s1 = smul.f32 %s2228_s29, %s2224_s26  ;;  %s748_s26 = scalar_lea.vmem %s3204_s22, %s2200_s28 }
 0x9e1   : > { %s1865_s23 = smul.f32 %s2228_s29, %s2226_s30 }
 0x9e2   : > { %s1866_s5 = smul.f32 %s1856_s1, %s1856_s1  ;;  %v1868_v2 = vstv %s1856_s1 }
 0x9e3   : > { %v1869_v31 = vsub.f32 %v3115_v29, %v1868_v2  ;;  %v1870_v25 = vsub.f32 %v3117_v63, %v1868_v2  ;;  %v1871_v34 = vsub.f32 %v3125_v1, %v1868_v2  ;;  %v1872_v20 = vsub.f32 %v3127_v61, %v1868_v2  ;;  %v1917_v29 = vpop.permute.xlu1 %1916 }
 0x9e4   : > { %s1867_s7 = ssub.f32 %s1865_s23, %s1866_s5  ;;  %v2057_v61 = vrot.slane %v2053_v14, 7 }
 0x9e6   : > { %s1873_s8 = sadd.f32 1e-05, %s1867_s7 }
 0x9e8   : > { %v1874_v10 = vstv %s1873_s8 }
 0x9e9   : > { %2310 = vrsqrt.f32 %v1874_v10  ;;  %vm1881_vm5 = vweird.f32 %v1874_v10 }
 0x9ef   : > { %v2311_v19 = vpop.eup %2310 }
 0x9f0   : > { %v1876_v11 = vmul.f32 %v2311_v19, %v1874_v10  ;;  %vm1882_vm3 = vweird.f32 %v2311_v19 }
 0x9f1   : > { %vm1883_vm4 = vmor %vm1881_vm5, %vm1882_vm3 }
 0x9f2   : > { %v1877_v12 = vmul.f32 %v2311_v19, %v1876_v11 }
 0x9f4   : > { %v1878_v45 = vmul.f32 0.5, %v1877_v12 }
 0x9f6   : > { %v1879_v13 = vsub.f32 1.5, %v1878_v45 }
 0x9f8   : > { %v1880_v43 = vmul.f32 %v2311_v19, %v1879_v13 }
 0x9fa   : > { %v1884_v44 = vsel %vm1883_vm4, %v2311_v19, %v1880_v43 }
 0x9fb   : > { %2229 = vpush %v1884_v44 }
 0xa03   : > { %v2040_v54 = vpop.permute.xlu2 %2039 }
 0xa2c   : > { %s2230_s27 = spop %2229 }
 0xa2d   : > { %v1886_v35 = vstv %s2230_s27 }
 0xa2e   : > { %v1887_v21 = vmul.f32 %v1886_v35, %v1869_v31  ;;  %v1888_v40 = vmul.f32 %v1886_v35, %v1870_v25  ;;  %v1889_v41 = vmul.f32 %v1886_v35, %v1871_v34  ;;  %v1890_v42 = vmul.f32 %v1886_v35, %v1872_v20 }
 0xa30   : > { %v1905_v49 = vmul.f32 %v1901_v4, %v1889_v41  ;;  %v1906_v50 = vmul.f32 %v1901_v4, %v1890_v42  ;;  %v1903_v51 = vmul.f32 %v1896_v48, %v1887_v21  ;;  %v1904_v30 = vmul.f32 %v1896_v48, %v1888_v40 }
 0xa32   : > { %v1921_v63 = vadd.f32 %v1917_v29, %v1905_v49  ;;  %v1922_v23 = vadd.f32 %v1917_v29, %v1906_v50  ;;  %v1919_v1 = vadd.f32 %v1912_v52, %v1903_v51  ;;  %v1920_v24 = vadd.f32 %v1912_v52, %v1904_v30 }
 0xa34   : > { %v2049_v57 = vadd.f32 %v2045_v26, %v1921_v63  ;;  %v2050_v58 = vadd.f32 %v2045_v26, %v1922_v23  ;;  %v2047_v59 = vadd.f32 %v2040_v54, %v1919_v1  ;;  %v2048_v18 = vadd.f32 %v2040_v54, %v1920_v24 }
 0xa36   : > { %v2061_v16 = vsel %vm1816_vm13, %v2049_v57, %v2057_v61  ;;  %v2062_v36 = vsel %vm1816_vm13, %v2050_v58, %v2058_v53  ;;  %2063 = vst [vmem:[%s748_s26] sm:$0xff] %v2047_v59 }
 0xa37   : > { %2064 = vst [vmem:[%s748_s26 + $0x8] sm:$0xff] %v2048_v18 }
 0xa38   : > { %2065 = vst [vmem:[%s748_s26 + $0x10] sm:$0xff] %v2061_v16 }
 0xa39   : > { %2066 = vst [vmem:[%s748_s26 + $0x18] sm:$0xff] %v2062_v36 }
 0xa3a PF: > { %s33_s3 = sadd.s32 1, %s2354_s3  }
 0xa3b   : > { %p30_p7 = scmp.ge.s32.totalorder %s33_s3, 4  }
 0xa3d   :  { %32 = sbr.rel (!%p30_p7) target bundleno = 13 (0xd), region = 152 }
 0xa42   :  { %2088 = vsyncpa [#allocation3], 1 }
 0xa43   :  { %2090 = vsyncpa [#allocation3 + $0x1], 1 }

</bundles_post_ra>
